<compile_context>
chip_gen: v7x
topology: tpu7x:2x2x1
jax: 0.10.0
libtpu: 0.0.40
codegen_flags: <defaults>
</compile_context>

<pallas_src>
import functools

import jax
import jax.numpy as jnp
from jax import lax
from jax.experimental import pallas as pl
from jax.experimental.pallas import tpu as pltpu

# ----------------------------- model config ---------------------------------
IN_CHANNELS = 8
NUM_SUB_LAYERS = 3
SUBGRAPH_WIDTH = 64          # W
GLOBAL_WIDTH = 64            # == W in the module
TRAJ_MLP_WIDTH = 64
PRED_LEN = 30
OUT_CHANNELS = 2
PRED_OUT = PRED_LEN * OUT_CHANNELS   # 60
PRED_PAD = 128                       # lane-dense padded head width (sliced to 60)

LN_EPS = 1e-5       # nn.LayerNorm default
L2_EPS = 1e-12      # F.normalize default
NEG_INF = -1e30


def _layernorm(z, gamma, beta):
    mu = jnp.mean(z, axis=-1, keepdims=True)
    var = jnp.mean(jnp.square(z - mu), axis=-1, keepdims=True)
    return (z - mu) * lax.rsqrt(var + LN_EPS) * gamma + beta


# ----------------------------- kernel ----------------------------------------
def _make_vectornet_kernel(BB, P, T, C):
    """Fused SubGraph + block-diagonal masked attention + traj MLP.

    One grid step handles BB samples.  Activation rows are ordered
    t*(BB*P) + s*P + p so the polyline max-pool is a max over T contiguous
    (BB*P, W) slabs (no in-kernel reshape of activations).
    """
    W = SUBGRAPH_WIDTH
    BP = BB * P                      # polylines per grid step
    # sublane offsets into the 64-lane weight stack (all multiples of 8)
    O0 = 0                           # w0      (C, W)
    O1 = C                           # w1      (2W, W)
    O2 = O1 + 2 * W                  # w2      (2W, W)
    OF = O2 + 2 * W                  # wf      (2W, W)
    OT1 = OF + 2 * W                 # wt1_pad (2W, W)  ([0; wt1])

    def kernel(x_ref,                # (T*BP, C) f32, rows t*BP + s*P + p
               within_ref,           # (1, BP)  f32, 1.0 where polyline valid
               wA_ref,               # (C + 8W, 64) f32 weight stack
               wB_ref,               # (3W, 128)    f32 weight stack
               vA_ref,               # (16, 64)     f32 bias / LN slab
               vB_ref,               # (8, 128)     f32 bias slab
               out_ref):             # (BB, PRED_PAD)
        f32 = jnp.float32
        x = x_ref[...].astype(f32)
        vA = vA_ref[...]
        vB = vB_ref[...]

        def v64(i):
            return vA[i:i + 1, :]

        def v128(i):
            return vB[i:i + 1, :]

        def ln_relu(z, ig, ib):
            return jnp.maximum(_layernorm(z, v64(ig), v64(ib)), 0.0)

        def pool(h):                 # (T*BP, W) -> (BP, W), max over T slabs
            m = h[0:BP]
            for t in range(1, T):
                m = jnp.maximum(m, h[t * BP:(t + 1) * BP])
            return m

        def with_pooled(h, pooled):  # lane-concat -> (T*BP, 2W), K=128 dot input
            return jnp.concatenate([h, jnp.tile(pooled, (T, 1))], axis=-1)

        # ---------------- SubGraph ----------------
        # layer 0: Linear(C -> W) -> LN -> ReLU -> pool
        h = ln_relu(jnp.dot(x, wA_ref[O0:O0 + C, :],
                            preferred_element_type=f32) + v64(0), 1, 2)
        pooled = pool(h)
        # layer 1: Linear(2W -> W) on concat([h, pooled])
        h = ln_relu(jnp.dot(with_pooled(h, pooled), wA_ref[O1:O1 + 2 * W, :],
                            preferred_element_type=f32) + v64(3), 4, 5)
        pooled = pool(h)
        # layer 2
        h = ln_relu(jnp.dot(with_pooled(h, pooled), wA_ref[O2:O2 + 2 * W, :],
                            preferred_element_type=f32) + v64(6), 7, 8)
        pooled = pool(h)
        # final Linear(2W -> W) + polyline max-pool (bias after pool is exact)
        feat = pool(jnp.dot(with_pooled(h, pooled), wA_ref[OF:OF + 2 * W, :],
                            preferred_element_type=f32)) + v64(9)      # (BP, W)

        # L2 normalize (F.normalize, p=2, dim=-1), rsqrt on the EUP slot
        ss = jnp.sum(feat * feat, axis=-1, keepdims=True)
        poly = feat * lax.rsqrt(jnp.maximum(ss, L2_EPS * L2_EPS))       # (BP, W)

        # -------- block-diagonal masked self-attention (target rows only) -----
        # fused K|V projection, lane-dense N=128
        kv = (jnp.dot(poly, wB_ref[0:W, :], preferred_element_type=f32)
              + v128(0))                                                # (BP, 128)

        # gather each sample's target polyline (row s*P) via a selection matmul
        rowi = lax.broadcasted_iota(jnp.int32, (BB, BP), 0)
        coli = lax.broadcasted_iota(jnp.int32, (BB, BP), 1)
        sel = (coli == rowi * P).astype(f32)
        q_in = jnp.dot(sel, poly, preferred_element_type=f32)           # (BB, W)
        # Q padded to 128 lanes ([q | 0]) so it contracts directly against kv
        q = (jnp.dot(q_in, wB_ref[W:2 * W, :], preferred_element_type=f32)
             + v128(1))                                                 # (BB, 128)

        # scores (no 1/sqrt(d): reference uses need_scale=False)
        s = lax.dot_general(q, kv, (((1,), (1,)), ((), ())),
                            preferred_element_type=f32)                 # (BB, BP)
        allow = ((coli >= rowi * P) & (coli < (rowi + 1) * P)
                 & (within_ref[...] > 0.0))
        s = jnp.where(allow, s, f32(NEG_INF))
        m = jnp.max(s, axis=-1, keepdims=True)
        e = jnp.exp(s - m)
        attn = e * pl.reciprocal(jnp.sum(e, axis=-1, keepdims=True), approx=True)
        attn = jnp.where(allow, attn, 0.0)

        g = jnp.dot(attn, kv, preferred_element_type=f32)               # (BB, 128)

        # ---------------- trajectory prediction MLP ----------------
        # wt1 is row-padded ([0; wt1]) so the K half of g is ignored without a slice
        t = (jnp.dot(g, wA_ref[OT1:OT1 + 2 * W, :], preferred_element_type=f32)
             + v64(10))
        t = jnp.maximum(_layernorm(t, v64(11), v64(12)), 0.0)
        out_ref[...] = (jnp.dot(t, wB_ref[2 * W:3 * W, :],
                                preferred_element_type=f32) + v128(2))

    return kernel


# ----------------------------- wrapper ----------------------------------------
def _pick_samples_per_step(B, rows_per_sample, max_rows=1024):
    """Largest divisor of B such that the per-step row count stays modest.

    For large B this yields >= 2 grid steps, which also keeps both v7x
    TensorCores busy under dimension_semantics=("parallel",).
    """
    cap = max(1, max_rows // rows_per_sample)
    bb = 1
    for d in range(1, B + 1):
        if B % d == 0 and d <= cap:
            bb = d
    return bb


def vectornet_forward(x, valid_len, params, samples_per_step=None):
    """x: [B, P, T, C] f32, valid_len: [B] i32 -> pred [B, PRED_LEN*2] f32."""
    B, P, T, C = x.shape
    W = SUBGRAPH_WIDTH
    f32 = jnp.float32
    sub_params, attn_params = params
    (w0, b0, g0, be0,
     w1, b1, g1, be1,
     w2, b2, g2, be2,
     wf, bf) = sub_params
    (wq, bq, wk, bk, wv, bv, wt1, bt1, gt, bet, wt2, bt2) = attn_params

    BB = samples_per_step or _pick_samples_per_step(B, T * P)
    assert B % BB == 0, (B, BB)
    G = B // BB
    BP = BB * P
    M = T * BP

    # activations: (G, M, C) with row index t*BP + s*P + p
    x_flat = (x.astype(f32).reshape(G, BB, P, T, C)
              .transpose(0, 3, 1, 2, 4).reshape(G, M, C))

    # per-polyline validity (within each sample): (G, 1, BP), 1.0 = valid
    p_idx = jnp.arange(P, dtype=jnp.int32)
    within = (p_idx[None, :] < valid_len[:, None]).astype(f32).reshape(G, 1, BP)

    # --- consolidated weight stacks (fewer DMA descriptors) ---
    # 64-lane stack: [w0; w1; w2; wf; [0; wt1]]   (sublane offsets multiples of 8)
    wt1_pad = jnp.concatenate([jnp.zeros((W, TRAJ_MLP_WIDTH), f32), wt1], axis=0)
    wA = jnp.concatenate([w0, w1, w2, wf, wt1_pad], axis=0)          # (C+8W, 64)
    # 128-lane stack: [wk|wv] ; [wq|0] ; [wt2|zero-pad to 128]
    zWW = jnp.zeros((W, W), f32)
    wB = jnp.concatenate([
        jnp.concatenate([wk, wv], axis=1),
        jnp.concatenate([wq, zWW], axis=1),
        jnp.concatenate([wt2, jnp.zeros((TRAJ_MLP_WIDTH, PRED_PAD - PRED_OUT),
                                        f32)], axis=1),
    ], axis=0)                                                       # (3W, 128)
    # bias / LN slabs
    vA = jnp.concatenate([b0, g0, be0, b1, g1, be1, b2, g2, be2, bf,
                          bt1, gt, bet, jnp.zeros((3, W), f32)], axis=0)  # (16,64)
    z64 = jnp.zeros((1, W), f32)
    vB = jnp.concatenate([
        jnp.concatenate([bk, bv], axis=1),
        jnp.concatenate([bq, z64], axis=1),
        jnp.concatenate([bt2, jnp.zeros((1, PRED_PAD - PRED_OUT), f32)], axis=1),
        jnp.zeros((5, PRED_PAD), f32),
    ], axis=0)                                                       # (8, 128)

    def full_spec(a):
        return pl.BlockSpec(a.shape, lambda g, _nd=a.ndim: (0,) * _nd)

    out = pl.pallas_call(
        _make_vectornet_kernel(BB, P, T, C),
        out_shape=jax.ShapeDtypeStruct((G, BB, PRED_PAD), f32),
        grid_spec=pltpu.PrefetchScalarGridSpec(
            num_scalar_prefetch=0,
            grid=(G,),
            in_specs=[
                pl.BlockSpec((None, M, C), lambda g: (g, 0, 0)),
                pl.BlockSpec((None, 1, BP), lambda g: (g, 0, 0)),
                full_spec(wA), full_spec(wB), full_spec(vA), full_spec(vB),
            ],
            out_specs=pl.BlockSpec((None, BB, PRED_PAD), lambda g: (g, 0, 0)),
        ),
        compiler_params=pltpu.CompilerParams(
            dimension_semantics=("parallel",)),   # sample-block axis -> megacore
    )(x_flat, within, wA, wB, vA, vB)

    return out.reshape(B, PRED_PAD)[:, :PRED_OUT]


# ----------------------------- parameter init ---------------------------------
def _dense(key, fan_in, fan_out, bias_scale=0.01):
    k1, k2 = jax.random.split(key)
    w = jax.random.normal(k1, (fan_in, fan_out), jnp.float32) / jnp.sqrt(
        jnp.float32(fan_in))
    b = bias_scale * jax.random.normal(k2, (1, fan_out), jnp.float32)
    return w, b


def init_params(key):
    W = SUBGRAPH_WIDTH
    keys = jax.random.split(key, 16)
    ones = lambda n: jnp.ones((1, n), jnp.float32)
    zeros = lambda n: jnp.zeros((1, n), jnp.float32)

    # SubGraph: layer widths 8 -> W, 2W -> W, 2W -> W, then final 2W -> W
    sub_params = []
    fan_in = IN_CHANNELS
    for i in range(NUM_SUB_LAYERS):
        w, b = _dense(keys[i], fan_in, W)
        sub_params += [w, b, ones(W), zeros(W)]
        fan_in = 2 * W
    wf, bf = _dense(keys[3], 2 * W, W)
    sub_params += [wf, bf]

    # SelfAttentionFCLayer + traj_pred_mlp
    wq, bq = _dense(keys[4], W, GLOBAL_WIDTH)
    wk, bk = _dense(keys[5], W, GLOBAL_WIDTH)
    wv, bv = _dense(keys[6], W, GLOBAL_WIDTH)
    wt1, bt1 = _dense(keys[7], GLOBAL_WIDTH, TRAJ_MLP_WIDTH)
    wt2, bt2 = _dense(keys[8], TRAJ_MLP_WIDTH, PRED_OUT)
    attn_params = [wq, bq, wk, bk, wv, bv,
                   wt1, bt1, ones(TRAJ_MLP_WIDTH), zeros(TRAJ_MLP_WIDTH),
                   wt2, bt2]
    return sub_params, attn_params


# ----------------------------- main --------------------------------------------
if __name__ == "__main__":
    key = jax.random.PRNGKey(0)
    k_param, k_x = jax.random.split(key)

    B = 2          # batch
    P = 8          # time_step_len (polylines per sample)
    T = 4          # vectors per polyline
    C = IN_CHANNELS

    params = init_params(k_param)
    x = jax.random.normal(k_x, (B, P, T, C), jnp.float32)
    valid_len = jnp.array([6, 8], dtype=jnp.int32)   # valid polylines per sample

    fwd = jax.jit(functools.partial(vectornet_forward, params=params))
    pred = fwd(x, valid_len)
    jax.block_until_ready(pred)

    assert pred.shape == (B, PRED_LEN * OUT_CHANNELS), pred.shape
    assert bool(jnp.all(jnp.isfinite(pred)))
    print("KERNEL_OK")
</pallas_src>

<mosaic_0001>
module attributes {stable_mosaic.version = 11 : i64} {
  func.func @kernel(%arg0: i32, %arg1: memref<1x64x8xf32, #tpu.memory_space<vmem>>, %arg2: memref<1x1x16xf32, #tpu.memory_space<vmem>>, %arg3: memref<520x64xf32, #tpu.memory_space<vmem>>, %arg4: memref<192x128xf32, #tpu.memory_space<vmem>>, %arg5: memref<16x64xf32, #tpu.memory_space<vmem>>, %arg6: memref<8x128xf32, #tpu.memory_space<vmem>>, %arg7: memref<1x2x128xf32, #tpu.memory_space<vmem>>) attributes {dimension_semantics = [#tpu.dimension_semantics<parallel>], iteration_bounds = array<i64: 1>, scalar_prefetch = 0 : i64, scratch_operands = 0 : i64, tpu.core_type = #tpu.core_type<tc>, window_params = [{transform_indices = @transform_0, window_bounds = array<i64: 1, 64, 8>}, {transform_indices = @transform_1, window_bounds = array<i64: 1, 1, 16>}, {pipeline_mode = #tpu.pipeline_mode<synchronous>, transform_indices = @transform_2, window_bounds = array<i64: 520, 64>}, {pipeline_mode = #tpu.pipeline_mode<synchronous>, transform_indices = @transform_3, window_bounds = array<i64: 192, 128>}, {pipeline_mode = #tpu.pipeline_mode<synchronous>, transform_indices = @transform_4, window_bounds = array<i64: 16, 64>}, {pipeline_mode = #tpu.pipeline_mode<synchronous>, transform_indices = @transform_5, window_bounds = array<i64: 8, 128>}, {transform_indices = @transform_6, window_bounds = array<i64: 1, 2, 128>}]} {
    %c0 = arith.constant 0 : index
    %c0_0 = arith.constant 0 : index
    %c0_1 = arith.constant 0 : index
    %0 = vector.load %arg1[%c0, %c0_0, %c0_1] : memref<1x64x8xf32, #tpu.memory_space<vmem>>, vector<1x64x8xf32>
    %1 = vector.shape_cast %0 : vector<1x64x8xf32> to vector<64x8xf32>
    %c0_2 = arith.constant 0 : index
    %c0_3 = arith.constant 0 : index
    %2 = vector.load %arg5[%c0_2, %c0_3] : memref<16x64xf32, #tpu.memory_space<vmem>>, vector<16x64xf32>
    %c0_4 = arith.constant 0 : index
    %c0_5 = arith.constant 0 : index
    %3 = vector.load %arg6[%c0_4, %c0_5] : memref<8x128xf32, #tpu.memory_space<vmem>>, vector<8x128xf32>
    %c0_6 = arith.constant 0 : index
    %c0_7 = arith.constant 0 : index
    %4 = vector.load %arg3[%c0_6, %c0_7] : memref<520x64xf32, #tpu.memory_space<vmem>>, vector<8x64xf32>
    %cst = arith.constant dense<0.000000e+00> : vector<64x64xf32>
    %5 = tpu.matmul %1, %4, %cst {dimension_numbers = #tpu.dot_dimension_numbers<[1], [0], [0], [1], [0, 0, 1, 1], [], []>} : vector<64x8xf32>, vector<8x64xf32>, vector<64x64xf32> -> vector<64x64xf32>
    %6 = vector.extract_strided_slice %2 {offsets = [0, 0], sizes = [1, 64], strides = [1, 1]} : vector<16x64xf32> to vector<1x64xf32>
    %7 = vector.broadcast %6 : vector<1x64xf32> to vector<64x64xf32>
    %8 = arith.addf %5, %7 : vector<64x64xf32>
    %9 = vector.extract_strided_slice %2 {offsets = [1, 0], sizes = [1, 64], strides = [1, 1]} : vector<16x64xf32> to vector<1x64xf32>
    %10 = vector.extract_strided_slice %2 {offsets = [2, 0], sizes = [1, 64], strides = [1, 1]} : vector<16x64xf32> to vector<1x64xf32>
    %cst_8 = arith.constant dense<0.000000e+00> : vector<64xf32>
    %11 = vector.multi_reduction <add>, %8, %cst_8 [1] : vector<64x64xf32> to vector<64xf32>
    %12 = vector.shape_cast %11 : vector<64xf32> to vector<64x1xf32>
    %cst_9 = arith.constant 6.400000e+01 : f32
    %13 = vector.broadcast %cst_9 : f32 to vector<64x1xf32>
    %14 = arith.divf %12, %13 : vector<64x1xf32>
    %15 = vector.broadcast %14 : vector<64x1xf32> to vector<64x64xf32>
    %16 = arith.subf %8, %15 : vector<64x64xf32>
    %17 = arith.mulf %16, %16 : vector<64x64xf32>
    %cst_10 = arith.constant dense<0.000000e+00> : vector<64xf32>
    %18 = vector.multi_reduction <add>, %17, %cst_10 [1] : vector<64x64xf32> to vector<64xf32>
    %19 = vector.shape_cast %18 : vector<64xf32> to vector<64x1xf32>
    %cst_11 = arith.constant 6.400000e+01 : f32
    %20 = vector.broadcast %cst_11 : f32 to vector<64x1xf32>
    %21 = arith.divf %19, %20 : vector<64x1xf32>
    %22 = vector.broadcast %14 : vector<64x1xf32> to vector<64x64xf32>
    %23 = arith.subf %8, %22 : vector<64x64xf32>
    %cst_12 = arith.constant 9.99999974E-6 : f32
    %24 = vector.broadcast %cst_12 : f32 to vector<64x1xf32>
    %25 = arith.addf %21, %24 : vector<64x1xf32>
    %26 = math.rsqrt %25 : vector<64x1xf32>
    %27 = vector.broadcast %26 : vector<64x1xf32> to vector<64x64xf32>
    %28 = arith.mulf %23, %27 : vector<64x64xf32>
    %29 = vector.broadcast %9 : vector<1x64xf32> to vector<64x64xf32>
    %30 = arith.mulf %28, %29 : vector<64x64xf32>
    %31 = vector.broadcast %10 : vector<1x64xf32> to vector<64x64xf32>
    %32 = arith.addf %30, %31 : vector<64x64xf32>
    %cst_13 = arith.constant 0.000000e+00 : f32
    %33 = vector.broadcast %cst_13 : f32 to vector<64x64xf32>
    %34 = arith.maximumf %32, %33 : vector<64x64xf32>
    %35 = vector.extract_strided_slice %34 {offsets = [0, 0], sizes = [16, 64], strides = [1, 1]} : vector<64x64xf32> to vector<16x64xf32>
    %36 = vector.extract_strided_slice %34 {offsets = [16, 0], sizes = [16, 64], strides = [1, 1]} : vector<64x64xf32> to vector<16x64xf32>
    %37 = arith.maximumf %35, %36 : vector<16x64xf32>
    %38 = vector.extract_strided_slice %34 {offsets = [32, 0], sizes = [16, 64], strides = [1, 1]} : vector<64x64xf32> to vector<16x64xf32>
    %39 = arith.maximumf %37, %38 : vector<16x64xf32>
    %40 = vector.extract_strided_slice %34 {offsets = [48, 0], sizes = [16, 64], strides = [1, 1]} : vector<64x64xf32> to vector<16x64xf32>
    %41 = arith.maximumf %39, %40 : vector<16x64xf32>
    %42 = tpu.concatenate %41, %41, %41, %41 in 0 : vector<16x64xf32>, vector<16x64xf32>, vector<16x64xf32>, vector<16x64xf32> -> vector<64x64xf32>
    %43 = tpu.concatenate %34, %42 in 1 : vector<64x64xf32>, vector<64x64xf32> -> vector<64x128xf32>
    %c8 = arith.constant 8 : index
    %c0_14 = arith.constant 0 : index
    %44 = vector.load %arg3[%c8, %c0_14] : memref<520x64xf32, #tpu.memory_space<vmem>>, vector<128x64xf32>
    %cst_15 = arith.constant dense<0.000000e+00> : vector<64x64xf32>
    %45 = tpu.matmul %43, %44, %cst_15 {dimension_numbers = #tpu.dot_dimension_numbers<[1], [0], [0], [1], [0, 0, 1, 1], [], []>} : vector<64x128xf32>, vector<128x64xf32>, vector<64x64xf32> -> vector<64x64xf32>
    %46 = vector.extract_strided_slice %2 {offsets = [3, 0], sizes = [1, 64], strides = [1, 1]} : vector<16x64xf32> to vector<1x64xf32>
    %47 = vector.broadcast %46 : vector<1x64xf32> to vector<64x64xf32>
    %48 = arith.addf %45, %47 : vector<64x64xf32>
    %49 = vector.extract_strided_slice %2 {offsets = [4, 0], sizes = [1, 64], strides = [1, 1]} : vector<16x64xf32> to vector<1x64xf32>
    %50 = vector.extract_strided_slice %2 {offsets = [5, 0], sizes = [1, 64], strides = [1, 1]} : vector<16x64xf32> to vector<1x64xf32>
    %cst_16 = arith.constant dense<0.000000e+00> : vector<64xf32>
    %51 = vector.multi_reduction <add>, %48, %cst_16 [1] : vector<64x64xf32> to vector<64xf32>
    %52 = vector.shape_cast %51 : vector<64xf32> to vector<64x1xf32>
    %cst_17 = arith.constant 6.400000e+01 : f32
    %53 = vector.broadcast %cst_17 : f32 to vector<64x1xf32>
    %54 = arith.divf %52, %53 : vector<64x1xf32>
    %55 = vector.broadcast %54 : vector<64x1xf32> to vector<64x64xf32>
    %56 = arith.subf %48, %55 : vector<64x64xf32>
    %57 = arith.mulf %56, %56 : vector<64x64xf32>
    %cst_18 = arith.constant dense<0.000000e+00> : vector<64xf32>
    %58 = vector.multi_reduction <add>, %57, %cst_18 [1] : vector<64x64xf32> to vector<64xf32>
    %59 = vector.shape_cast %58 : vector<64xf32> to vector<64x1xf32>
    %cst_19 = arith.constant 6.400000e+01 : f32
    %60 = vector.broadcast %cst_19 : f32 to vector<64x1xf32>
    %61 = arith.divf %59, %60 : vector<64x1xf32>
    %62 = vector.broadcast %54 : vector<64x1xf32> to vector<64x64xf32>
    %63 = arith.subf %48, %62 : vector<64x64xf32>
    %cst_20 = arith.constant 9.99999974E-6 : f32
    %64 = vector.broadcast %cst_20 : f32 to vector<64x1xf32>
    %65 = arith.addf %61, %64 : vector<64x1xf32>
    %66 = math.rsqrt %65 : vector<64x1xf32>
    %67 = vector.broadcast %66 : vector<64x1xf32> to vector<64x64xf32>
    %68 = arith.mulf %63, %67 : vector<64x64xf32>
    %69 = vector.broadcast %49 : vector<1x64xf32> to vector<64x64xf32>
    %70 = arith.mulf %68, %69 : vector<64x64xf32>
    %71 = vector.broadcast %50 : vector<1x64xf32> to vector<64x64xf32>
    %72 = arith.addf %70, %71 : vector<64x64xf32>
    %cst_21 = arith.constant 0.000000e+00 : f32
    %73 = vector.broadcast %cst_21 : f32 to vector<64x64xf32>
    %74 = arith.maximumf %72, %73 : vector<64x64xf32>
    %75 = vector.extract_strided_slice %74 {offsets = [0, 0], sizes = [16, 64], strides = [1, 1]} : vector<64x64xf32> to vector<16x64xf32>
    %76 = vector.extract_strided_slice %74 {offsets = [16, 0], sizes = [16, 64], strides = [1, 1]} : vector<64x64xf32> to vector<16x64xf32>
    %77 = arith.maximumf %75, %76 : vector<16x64xf32>
    %78 = vector.extract_strided_slice %74 {offsets = [32, 0], sizes = [16, 64], strides = [1, 1]} : vector<64x64xf32> to vector<16x64xf32>
    %79 = arith.maximumf %77, %78 : vector<16x64xf32>
    %80 = vector.extract_strided_slice %74 {offsets = [48, 0], sizes = [16, 64], strides = [1, 1]} : vector<64x64xf32> to vector<16x64xf32>
    %81 = arith.maximumf %79, %80 : vector<16x64xf32>
    %82 = tpu.concatenate %81, %81, %81, %81 in 0 : vector<16x64xf32>, vector<16x64xf32>, vector<16x64xf32>, vector<16x64xf32> -> vector<64x64xf32>
    %83 = tpu.concatenate %74, %82 in 1 : vector<64x64xf32>, vector<64x64xf32> -> vector<64x128xf32>
    %c136 = arith.constant 136 : index
    %c0_22 = arith.constant 0 : index
    %84 = vector.load %arg3[%c136, %c0_22] : memref<520x64xf32, #tpu.memory_space<vmem>>, vector<128x64xf32>
    %cst_23 = arith.constant dense<0.000000e+00> : vector<64x64xf32>
    %85 = tpu.matmul %83, %84, %cst_23 {dimension_numbers = #tpu.dot_dimension_numbers<[1], [0], [0], [1], [0, 0, 1, 1], [], []>} : vector<64x128xf32>, vector<128x64xf32>, vector<64x64xf32> -> vector<64x64xf32>
    %86 = vector.extract_strided_slice %2 {offsets = [6, 0], sizes = [1, 64], strides = [1, 1]} : vector<16x64xf32> to vector<1x64xf32>
    %87 = vector.broadcast %86 : vector<1x64xf32> to vector<64x64xf32>
    %88 = arith.addf %85, %87 : vector<64x64xf32>
    %89 = vector.extract_strided_slice %2 {offsets = [7, 0], sizes = [1, 64], strides = [1, 1]} : vector<16x64xf32> to vector<1x64xf32>
    %90 = vector.extract_strided_slice %2 {offsets = [8, 0], sizes = [1, 64], strides = [1, 1]} : vector<16x64xf32> to vector<1x64xf32>
    %cst_24 = arith.constant dense<0.000000e+00> : vector<64xf32>
    %91 = vector.multi_reduction <add>, %88, %cst_24 [1] : vector<64x64xf32> to vector<64xf32>
    %92 = vector.shape_cast %91 : vector<64xf32> to vector<64x1xf32>
    %cst_25 = arith.constant 6.400000e+01 : f32
    %93 = vector.broadcast %cst_25 : f32 to vector<64x1xf32>
    %94 = arith.divf %92, %93 : vector<64x1xf32>
    %95 = vector.broadcast %94 : vector<64x1xf32> to vector<64x64xf32>
    %96 = arith.subf %88, %95 : vector<64x64xf32>
    %97 = arith.mulf %96, %96 : vector<64x64xf32>
    %cst_26 = arith.constant dense<0.000000e+00> : vector<64xf32>
    %98 = vector.multi_reduction <add>, %97, %cst_26 [1] : vector<64x64xf32> to vector<64xf32>
    %99 = vector.shape_cast %98 : vector<64xf32> to vector<64x1xf32>
    %cst_27 = arith.constant 6.400000e+01 : f32
    %100 = vector.broadcast %cst_27 : f32 to vector<64x1xf32>
    %101 = arith.divf %99, %100 : vector<64x1xf32>
    %102 = vector.broadcast %94 : vector<64x1xf32> to vector<64x64xf32>
    %103 = arith.subf %88, %102 : vector<64x64xf32>
    %cst_28 = arith.constant 9.99999974E-6 : f32
    %104 = vector.broadcast %cst_28 : f32 to vector<64x1xf32>
    %105 = arith.addf %101, %104 : vector<64x1xf32>
    %106 = math.rsqrt %105 : vector<64x1xf32>
    %107 = vector.broadcast %106 : vector<64x1xf32> to vector<64x64xf32>
    %108 = arith.mulf %103, %107 : vector<64x64xf32>
    %109 = vector.broadcast %89 : vector<1x64xf32> to vector<64x64xf32>
    %110 = arith.mulf %108, %109 : vector<64x64xf32>
    %111 = vector.broadcast %90 : vector<1x64xf32> to vector<64x64xf32>
    %112 = arith.addf %110, %111 : vector<64x64xf32>
    %cst_29 = arith.constant 0.000000e+00 : f32
    %113 = vector.broadcast %cst_29 : f32 to vector<64x64xf32>
    %114 = arith.maximumf %112, %113 : vector<64x64xf32>
    %115 = vector.extract_strided_slice %114 {offsets = [0, 0], sizes = [16, 64], strides = [1, 1]} : vector<64x64xf32> to vector<16x64xf32>
    %116 = vector.extract_strided_slice %114 {offsets = [16, 0], sizes = [16, 64], strides = [1, 1]} : vector<64x64xf32> to vector<16x64xf32>
    %117 = arith.maximumf %115, %116 : vector<16x64xf32>
    %118 = vector.extract_strided_slice %114 {offsets = [32, 0], sizes = [16, 64], strides = [1, 1]} : vector<64x64xf32> to vector<16x64xf32>
    %119 = arith.maximumf %117, %118 : vector<16x64xf32>
    %120 = vector.extract_strided_slice %114 {offsets = [48, 0], sizes = [16, 64], strides = [1, 1]} : vector<64x64xf32> to vector<16x64xf32>
    %121 = arith.maximumf %119, %120 : vector<16x64xf32>
    %122 = tpu.concatenate %121, %121, %121, %121 in 0 : vector<16x64xf32>, vector<16x64xf32>, vector<16x64xf32>, vector<16x64xf32> -> vector<64x64xf32>
    %123 = tpu.concatenate %114, %122 in 1 : vector<64x64xf32>, vector<64x64xf32> -> vector<64x128xf32>
    %c264 = arith.constant 264 : index
    %c0_30 = arith.constant 0 : index
    %124 = vector.load %arg3[%c264, %c0_30] : memref<520x64xf32, #tpu.memory_space<vmem>>, vector<128x64xf32>
    %cst_31 = arith.constant dense<0.000000e+00> : vector<64x64xf32>
    %125 = tpu.matmul %123, %124, %cst_31 {dimension_numbers = #tpu.dot_dimension_numbers<[1], [0], [0], [1], [0, 0, 1, 1], [], []>} : vector<64x128xf32>, vector<128x64xf32>, vector<64x64xf32> -> vector<64x64xf32>
    %126 = vector.extract_strided_slice %125 {offsets = [0, 0], sizes = [16, 64], strides = [1, 1]} : vector<64x64xf32> to vector<16x64xf32>
    %127 = vector.extract_strided_slice %125 {offsets = [16, 0], sizes = [16, 64], strides = [1, 1]} : vector<64x64xf32> to vector<16x64xf32>
    %128 = arith.maximumf %126, %127 : vector<16x64xf32>
    %129 = vector.extract_strided_slice %125 {offsets = [32, 0], sizes = [16, 64], strides = [1, 1]} : vector<64x64xf32> to vector<16x64xf32>
    %130 = arith.maximumf %128, %129 : vector<16x64xf32>
    %131 = vector.extract_strided_slice %125 {offsets = [48, 0], sizes = [16, 64], strides = [1, 1]} : vector<64x64xf32> to vector<16x64xf32>
    %132 = arith.maximumf %130, %131 : vector<16x64xf32>
    %133 = vector.extract_strided_slice %2 {offsets = [9, 0], sizes = [1, 64], strides = [1, 1]} : vector<16x64xf32> to vector<1x64xf32>
    %134 = vector.broadcast %133 : vector<1x64xf32> to vector<16x64xf32>
    %135 = arith.addf %132, %134 : vector<16x64xf32>
    %136 = arith.mulf %135, %135 : vector<16x64xf32>
    %cst_32 = arith.constant dense<0.000000e+00> : vector<16xf32>
    %137 = vector.multi_reduction <add>, %136, %cst_32 [1] : vector<16x64xf32> to vector<16xf32>
    %138 = vector.shape_cast %137 : vector<16xf32> to vector<16x1xf32>
    %cst_33 = arith.constant 1.000000e-24 : f32
    %139 = vector.broadcast %cst_33 : f32 to vector<16x1xf32>
    %140 = arith.maximumf %138, %139 : vector<16x1xf32>
    %141 = math.rsqrt %140 : vector<16x1xf32>
    %142 = vector.broadcast %141 : vector<16x1xf32> to vector<16x64xf32>
    %143 = arith.mulf %135, %142 : vector<16x64xf32>
    %c0_34 = arith.constant 0 : index
    %c0_35 = arith.constant 0 : index
    %144 = vector.load %arg4[%c0_34, %c0_35] : memref<192x128xf32, #tpu.memory_space<vmem>>, vector<64x128xf32>
    %cst_36 = arith.constant dense<0.000000e+00> : vector<16x128xf32>
    %145 = tpu.matmul %143, %144, %cst_36 {dimension_numbers = #tpu.dot_dimension_numbers<[1], [0], [0], [1], [0, 0, 1, 1], [], []>} : vector<16x64xf32>, vector<64x128xf32>, vector<16x128xf32> -> vector<16x128xf32>
    %146 = vector.extract_strided_slice %3 {offsets = [0, 0], sizes = [1, 128], strides = [1, 1]} : vector<8x128xf32> to vector<1x128xf32>
    %147 = vector.broadcast %146 : vector<1x128xf32> to vector<16x128xf32>
    %148 = arith.addf %145, %147 : vector<16x128xf32>
    %149 = tpu.iota {dimensions = array<i32: 0>} : vector<2x16xi32>
    %150 = tpu.iota {dimensions = array<i32: 1>} : vector<2x16xi32>
    %c8_i32 = arith.constant 8 : i32
    %151 = vector.broadcast %c8_i32 : i32 to vector<2x16xi32>
    %152 = arith.muli %149, %151 : vector<2x16xi32>
    %153 = arith.cmpi eq, %150, %152 : vector<2x16xi32>
    %154 = arith.extui %153 : vector<2x16xi1> to vector<2x16xi32>
    %155 = arith.sitofp %154 : vector<2x16xi32> to vector<2x16xf32>
    %cst_37 = arith.constant dense<0.000000e+00> : vector<2x64xf32>
    %156 = tpu.matmul %155, %143, %cst_37 {dimension_numbers = #tpu.dot_dimension_numbers<[1], [0], [0], [1], [0, 0, 1, 1], [], []>} : vector<2x16xf32>, vector<16x64xf32>, vector<2x64xf32> -> vector<2x64xf32>
    %c64 = arith.constant 64 : index
    %c0_38 = arith.constant 0 : index
    %157 = vector.load %arg4[%c64, %c0_38] : memref<192x128xf32, #tpu.memory_space<vmem>>, vector<64x128xf32>
    %cst_39 = arith.constant dense<0.000000e+00> : vector<2x128xf32>
    %158 = tpu.matmul %156, %157, %cst_39 {dimension_numbers = #tpu.dot_dimension_numbers<[1], [0], [0], [1], [0, 0, 1, 1], [], []>} : vector<2x64xf32>, vector<64x128xf32>, vector<2x128xf32> -> vector<2x128xf32>
    %159 = vector.extract_strided_slice %3 {offsets = [1, 0], sizes = [1, 128], strides = [1, 1]} : vector<8x128xf32> to vector<1x128xf32>
    %160 = vector.broadcast %159 : vector<1x128xf32> to vector<2x128xf32>
    %161 = arith.addf %158, %160 : vector<2x128xf32>
    %cst_40 = arith.constant dense<0.000000e+00> : vector<2x16xf32>
    %162 = tpu.matmul %161, %148, %cst_40 {dimension_numbers = #tpu.dot_dimension_numbers<[1], [1], [0], [0], [0, 0, 1, 0], [], []>} : vector<2x128xf32>, vector<16x128xf32>, vector<2x16xf32> -> vector<2x16xf32>
    %c8_i32_41 = arith.constant 8 : i32
    %163 = vector.broadcast %c8_i32_41 : i32 to vector<2x16xi32>
    %164 = arith.muli %149, %163 : vector<2x16xi32>
    %165 = arith.cmpi sge, %150, %164 : vector<2x16xi32>
    %c1_i32 = arith.constant 1 : i32
    %166 = vector.broadcast %c1_i32 : i32 to vector<2x16xi32>
    %167 = arith.addi %149, %166 : vector<2x16xi32>
    %c8_i32_42 = arith.constant 8 : i32
    %168 = vector.broadcast %c8_i32_42 : i32 to vector<2x16xi32>
    %169 = arith.muli %167, %168 : vector<2x16xi32>
    %170 = arith.cmpi slt, %150, %169 : vector<2x16xi32>
    %171 = arith.andi %165, %170 : vector<2x16xi1>
    %c0_43 = arith.constant 0 : index
    %c0_44 = arith.constant 0 : index
    %c0_45 = arith.constant 0 : index
    %172 = vector.load %arg2[%c0_43, %c0_44, %c0_45] : memref<1x1x16xf32, #tpu.memory_space<vmem>>, vector<1x1x16xf32>
    %173 = vector.shape_cast %172 : vector<1x1x16xf32> to vector<1x16xf32>
    %cst_46 = arith.constant 0.000000e+00 : f32
    %174 = vector.broadcast %cst_46 : f32 to vector<1x16xf32>
    %175 = arith.cmpf ogt, %173, %174 : vector<1x16xf32>
    %176 = vector.broadcast %175 : vector<1x16xi1> to vector<2x16xi1>
    %177 = arith.andi %171, %176 : vector<2x16xi1>
    %cst_47 = arith.constant -1.000000e+30 : f32
    %178 = vector.broadcast %cst_47 : f32 to vector<2x16xf32>
    %179 = arith.select %177, %162, %178 : vector<2x16xi1>, vector<2x16xf32>
    %cst_48 = arith.constant dense<0xFF800000> : vector<2xf32>
    %180 = vector.multi_reduction <maximumf>, %179, %cst_48 [1] : vector<2x16xf32> to vector<2xf32>
    %181 = vector.shape_cast %180 : vector<2xf32> to vector<2x1xf32>
    %182 = vector.broadcast %181 : vector<2x1xf32> to vector<2x16xf32>
    %183 = arith.subf %179, %182 : vector<2x16xf32>
    %184 = math.exp %183 : vector<2x16xf32>
    %cst_49 = arith.constant dense<0.000000e+00> : vector<2xf32>
    %185 = vector.multi_reduction <add>, %184, %cst_49 [1] : vector<2x16xf32> to vector<2xf32>
    %186 = vector.shape_cast %185 : vector<2xf32> to vector<2x1xf32>
    %187 = tpu.reciprocal %186 {approx = true} : vector<2x1xf32> -> vector<2x1xf32>
    %188 = vector.broadcast %187 : vector<2x1xf32> to vector<2x16xf32>
    %189 = arith.mulf %184, %188 : vector<2x16xf32>
    %cst_50 = arith.constant 0.000000e+00 : f32
    %190 = vector.broadcast %cst_50 : f32 to vector<2x16xf32>
    %191 = arith.select %177, %189, %190 : vector<2x16xi1>, vector<2x16xf32>
    %cst_51 = arith.constant dense<0.000000e+00> : vector<2x128xf32>
    %192 = tpu.matmul %191, %148, %cst_51 {dimension_numbers = #tpu.dot_dimension_numbers<[1], [0], [0], [1], [0, 0, 1, 1], [], []>} : vector<2x16xf32>, vector<16x128xf32>, vector<2x128xf32> -> vector<2x128xf32>
    %c392 = arith.constant 392 : index
    %c0_52 = arith.constant 0 : index
    %193 = vector.load %arg3[%c392, %c0_52] : memref<520x64xf32, #tpu.memory_space<vmem>>, vector<128x64xf32>
    %cst_53 = arith.constant dense<0.000000e+00> : vector<2x64xf32>
    %194 = tpu.matmul %192, %193, %cst_53 {dimension_numbers = #tpu.dot_dimension_numbers<[1], [0], [0], [1], [0, 0, 1, 1], [], []>} : vector<2x128xf32>, vector<128x64xf32>, vector<2x64xf32> -> vector<2x64xf32>
    %195 = vector.extract_strided_slice %2 {offsets = [10, 0], sizes = [1, 64], strides = [1, 1]} : vector<16x64xf32> to vector<1x64xf32>
    %196 = vector.broadcast %195 : vector<1x64xf32> to vector<2x64xf32>
    %197 = arith.addf %194, %196 : vector<2x64xf32>
    %198 = vector.extract_strided_slice %2 {offsets = [11, 0], sizes = [1, 64], strides = [1, 1]} : vector<16x64xf32> to vector<1x64xf32>
    %199 = vector.extract_strided_slice %2 {offsets = [12, 0], sizes = [1, 64], strides = [1, 1]} : vector<16x64xf32> to vector<1x64xf32>
    %cst_54 = arith.constant dense<0.000000e+00> : vector<2xf32>
    %200 = vector.multi_reduction <add>, %197, %cst_54 [1] : vector<2x64xf32> to vector<2xf32>
    %201 = vector.shape_cast %200 : vector<2xf32> to vector<2x1xf32>
    %cst_55 = arith.constant 6.400000e+01 : f32
    %202 = vector.broadcast %cst_55 : f32 to vector<2x1xf32>
    %203 = arith.divf %201, %202 : vector<2x1xf32>
    %204 = vector.broadcast %203 : vector<2x1xf32> to vector<2x64xf32>
    %205 = arith.subf %197, %204 : vector<2x64xf32>
    %206 = arith.mulf %205, %205 : vector<2x64xf32>
    %cst_56 = arith.constant dense<0.000000e+00> : vector<2xf32>
    %207 = vector.multi_reduction <add>, %206, %cst_56 [1] : vector<2x64xf32> to vector<2xf32>
    %208 = vector.shape_cast %207 : vector<2xf32> to vector<2x1xf32>
    %cst_57 = arith.constant 6.400000e+01 : f32
    %209 = vector.broadcast %cst_57 : f32 to vector<2x1xf32>
    %210 = arith.divf %208, %209 : vector<2x1xf32>
    %211 = vector.broadcast %203 : vector<2x1xf32> to vector<2x64xf32>
    %212 = arith.subf %197, %211 : vector<2x64xf32>
    %cst_58 = arith.constant 9.99999974E-6 : f32
    %213 = vector.broadcast %cst_58 : f32 to vector<2x1xf32>
    %214 = arith.addf %210, %213 : vector<2x1xf32>
    %215 = math.rsqrt %214 : vector<2x1xf32>
    %216 = vector.broadcast %215 : vector<2x1xf32> to vector<2x64xf32>
    %217 = arith.mulf %212, %216 : vector<2x64xf32>
    %218 = vector.broadcast %198 : vector<1x64xf32> to vector<2x64xf32>
    %219 = arith.mulf %217, %218 : vector<2x64xf32>
    %220 = vector.broadcast %199 : vector<1x64xf32> to vector<2x64xf32>
    %221 = arith.addf %219, %220 : vector<2x64xf32>
    %cst_59 = arith.constant 0.000000e+00 : f32
    %222 = vector.broadcast %cst_59 : f32 to vector<2x64xf32>
    %223 = arith.maximumf %221, %222 : vector<2x64xf32>
    %c128 = arith.constant 128 : index
    %c0_60 = arith.constant 0 : index
    %224 = vector.load %arg4[%c128, %c0_60] : memref<192x128xf32, #tpu.memory_space<vmem>>, vector<64x128xf32>
    %cst_61 = arith.constant dense<0.000000e+00> : vector<2x128xf32>
    %225 = tpu.matmul %223, %224, %cst_61 {dimension_numbers = #tpu.dot_dimension_numbers<[1], [0], [0], [1], [0, 0, 1, 1], [], []>} : vector<2x64xf32>, vector<64x128xf32>, vector<2x128xf32> -> vector<2x128xf32>
    %226 = vector.extract_strided_slice %3 {offsets = [2, 0], sizes = [1, 128], strides = [1, 1]} : vector<8x128xf32> to vector<1x128xf32>
    %227 = vector.broadcast %226 : vector<1x128xf32> to vector<2x128xf32>
    %228 = arith.addf %225, %227 : vector<2x128xf32>
    %c0_62 = arith.constant 0 : index
    %c0_63 = arith.constant 0 : index
    %c0_64 = arith.constant 0 : index
    %229 = vector.load %arg7[%c0_62, %c0_63, %c0_64] : memref<1x2x128xf32, #tpu.memory_space<vmem>>, vector<1x2x128xf32>
    %230 = vector.shape_cast %229 : vector<1x2x128xf32> to vector<2x128xf32>
    %231 = vector.shape_cast %228 : vector<2x128xf32> to vector<1x2x128xf32>
    tpu.vector_store %arg7[%c0_62, %c0_63, %c0_64], %231 {strides = array<i32>} : memref<1x2x128xf32, #tpu.memory_space<vmem>>, vector<1x2x128xf32>,
    return
  }
  func.func @transform_0(%arg0: i32) -> (i32, i32, i32) {
    %c0_i32 = arith.constant 0 : i32
    %c0_i32_0 = arith.constant 0 : i32
    %c0_i32_1 = arith.constant 0 : i32
    return %arg0, %c0_i32, %c0_i32_0 : i32, i32, i32
  }
  func.func @transform_1(%arg0: i32) -> (i32, i32, i32) {
    %c0_i32 = arith.constant 0 : i32
    %c0_i32_0 = arith.constant 0 : i32
    %c0_i32_1 = arith.constant 0 : i32
    return %arg0, %c0_i32, %c0_i32_0 : i32, i32, i32
  }
  func.func @transform_2(%arg0: i32) -> (i32, i32) {
    %c0_i32 = arith.constant 0 : i32
    %c0_i32_0 = arith.constant 0 : i32
    %c0_i32_1 = arith.constant 0 : i32
    return %c0_i32, %c0_i32_0 : i32, i32
  }
  func.func @transform_3(%arg0: i32) -> (i32, i32) {
    %c0_i32 = arith.constant 0 : i32
    %c0_i32_0 = arith.constant 0 : i32
    %c0_i32_1 = arith.constant 0 : i32
    return %c0_i32, %c0_i32_0 : i32, i32
  }
  func.func @transform_4(%arg0: i32) -> (i32, i32) {
    %c0_i32 = arith.constant 0 : i32
    %c0_i32_0 = arith.constant 0 : i32
    %c0_i32_1 = arith.constant 0 : i32
    return %c0_i32, %c0_i32_0 : i32, i32
  }
  func.func @transform_5(%arg0: i32) -> (i32, i32) {
    %c0_i32 = arith.constant 0 : i32
    %c0_i32_0 = arith.constant 0 : i32
    %c0_i32_1 = arith.constant 0 : i32
    return %c0_i32, %c0_i32_0 : i32, i32
  }
  func.func @transform_6(%arg0: i32) -> (i32, i32, i32) {
    %c0_i32 = arith.constant 0 : i32
    %c0_i32_0 = arith.constant 0 : i32
    %c0_i32_1 = arith.constant 0 : i32
    return %arg0, %c0_i32, %c0_i32_0 : i32, i32, i32
  }
}

</mosaic_0001>

<bundles_post_ra>
// kernel: vectornet_forward.1
= control target key start
LH: loop header
LB: loop body
LE: loop exit
PB: predicated region body
PF: predicated region fallthrough
CT: control target
= control target key end

     0   :  { %11 = vsyncpa [#allocation3], 0  ;;  %s2883_s0 = inlined_call_operand.vmem [shape: f32[1,64,8], index: 0, kind: input, shape index: {}]   ;;  %s2884_s1 = inlined_call_operand.vmem [shape: f32[1,1,16], index: 1, kind: input, shape index: {}]   ;;  %s2885_s2 = inlined_call_operand.hbm [shape: f32[520,64], index: 2, kind: input, shape index: {}]   ;;  %s2886_s3 = inlined_call_operand.hbm [shape: f32[192,128], index: 3, kind: input, shape index: {}]   ;;  %s2887_s4 = inlined_call_operand.vmem [shape: f32[16,64], index: 4, kind: input, shape index: {}]   ;;  %s2888_s5 = inlined_call_operand.vmem [shape: f32[8,128], index: 5, kind: input, shape index: {}]   ;;  %s2889_s6 = inlined_call_operand.hbm [shape: f32[1,2,128], index: 6, kind: output, shape index: {}]  }
   0x1   :  { %12 = vsyncpa [#allocation6], 0 }
   0x2   :  { %13 = vsyncpa [#allocation4], 0  ;;  %s2453_s21 = smov [#allocation2]   ;;  %s2381_s25 = scalar_lea.hbm %s2885_s2, 8320 }
   0x3   :  { %s23_s22 = sshll.u32 %s2453_s21, 4  ;;  %p2382_p0 = scmp.ne.s32.totalorder %s2885_s2, %s2381_s25  ;;  %s24_s22 = int_to_ptr.vmem [resolvable:$true] %s23_s22 }
   0x4   :  { %p2385_p1 = scmp.lt.u32.totalorder %s2381_s25, %s2885_s2 }
   0x6   :  { %p2387_p2 = pnand %p2385_p1, %p2382_p0 }
   0x8   :  { %2390 = shalt.err (!%p2387_p2)
}
   0x9   :  { %s2391_s30 = scalar_lea.vmem %s24_s22, 8320  ;;  %p2396_p4 = scmp.lt.s32.totalorder %s24_s22, %s24_s22 }
   0xa   :  { %p2392_p3 = scmp.ne.s32.totalorder %s24_s22, %s2391_s30  ;;  %p2397_p5 = scmp.lt.s32.totalorder %s2391_s30, %s2391_s30 }
   0xc   :  { %p2398_p6 = por %p2397_p5, %p2396_p4 }
   0xe   :  { %p2399_p7 = pnand %p2398_p6, %p2392_p3 }
  0x10   :  { %2402 = shalt.err (!%p2399_p7)
}
  0x11   :  { %s2454_s7 = smov 128   ;;  %s2455_s8 = smov 8  }
  0x12   :  { %29 = dma.hbm_to_vmem [thread:$0]  %s2885_s2, 8320, %s24_s22, [#allocation3], %s2454_s7, %s2454_s7, %s2455_s8  }
  0x13   :  { %s2456_s11 = smov [#allocation5]   ;;  %s2403_s15 = scalar_lea.hbm %s2886_s3, 3072 }
  0x14   :  { %s35_s12 = sshll.u32 %s2456_s11, 4  ;;  %p2404_p8 = scmp.ne.s32.totalorder %s2886_s3, %s2403_s15  ;;  %s36_s12 = int_to_ptr.vmem [resolvable:$true] %s35_s12 }
  0x15   :  { %p2407_p9 = scmp.lt.u32.totalorder %s2403_s15, %s2886_s3 }
  0x17   :  { %p2409_p10 = pnand %p2407_p9, %p2404_p8 }
  0x19   :  { %2412 = shalt.err (!%p2409_p10)
}
  0x1a   :  { %s2413_s20 = scalar_lea.vmem %s36_s12, 3072  ;;  %p2418_p12 = scmp.lt.s32.totalorder %s36_s12, %s36_s12 }
  0x1b   :  { %p2414_p11 = scmp.ne.s32.totalorder %s36_s12, %s2413_s20  ;;  %p2419_p13 = scmp.lt.s32.totalorder %s2413_s20, %s2413_s20 }
  0x1d   :  { %p2420_p0 = por %p2419_p13, %p2418_p12 }
  0x1f   :  { %p2421_p1 = pnand %p2420_p0, %p2414_p11 }
  0x21   :  { %2424 = shalt.err (!%p2421_p1)
}
  0x22   :  { %41 = dma.hbm_to_vmem [thread:$0]  %s2886_s3, 3072, %s36_s12, [#allocation6], %s2454_s7, %s2454_s7, %s2455_s8  }
  0x23   :  { %2447 = dma.done.wait [#allocation3], 8320  }
  0x24   :  { %2448 = vsyncadd [#allocation3], 4294958976 }
  0x25   :  { %2449 = dma.done.wait [#allocation6], 3072  }
  0x26   :  { %2450 = vsyncadd [#allocation6], 4294964224  ;;  %vm68_vm0 = vcmask 64512   ;;  %v63_v0 = vld [vmem:[#allocation2] sm:$0xff]  ;;  %v53_v2 = vld [vmem:[%s2883_s0 + $0x8] sm:$0xff]  ;;  %v64_v9 = vlaneseq  ;;  %vm198_vm1 = vcmask 523264  }
  0x27   :  { %v52_v1 = vld [vmem:[%s2883_s0] sm:$0xff]  ;;  %1869 = vmatprep.subr.mxu0 %v63_v0  ;;  %v54_v3 = vld [vmem:[%s2883_s0 + $0x10] sm:$0xff]  ;;  %v55_v4 = vld [vmem:[%s2883_s0 + $0x18] sm:$0xff]  ;;  %vm2459_vm2 = vmmov 0   ;;  %vm1172_vm4 = vcmask 130048   ;;  %vm1416_vm11 = vcmask 123904  }
  0x28   :  { %1871 = vmatprep.mubr.msk.f32.mxu0 %vm68_vm0, %v52_v1  ;;  %1870 = vmatpush3.msra.mxu0 %v63_v0  ;;  %v56_v5 = vld [vmem:[%s2883_s0 + $0x20] sm:$0xff]  ;;  %v57_v6 = vld [vmem:[%s2883_s0 + $0x28] sm:$0xff]  ;;  %v58_v7 = vld [vmem:[%s2883_s0 + $0x30] sm:$0xff]  ;;  %v2555_v10 = vshrl.u32 %v64_v9, 7  ;;  %vm1592_vm12 = vcmask 517120  }
  0x29   :  { %1872 = vmatmul.mubr.msk.f32.vlgmr.msra.gmra.mrb[0].mxu0 %vm68_vm0, %v53_v2  ;;  %v59_v8 = vld [vmem:[%s2883_s0 + $0x38] sm:$0xff]  ;;  %v2563_v12 = vld [vmem:[%s2887_s4] sm:$0xff]  ;;  %s2457_s0 = smov 64  }
  0x2a   :  { %1874 = vmatprep.mubr.msk.f32.mxu0 %vm68_vm0, %v54_v3  ;;  %v2558_v11 = vsub.s32 0, %v2555_v10 }
  0x2c   :  { %v67_v13 = vrot.slane %v2563_v12, %v2558_v11 }
  0x2d   :  { %1875 = vmatmul.mubr.msk.f32.gmra.mrb[2].mxu0 %vm68_vm0, %v55_v4 }
  0x2e   :  { %1877 = vmatprep.mubr.msk.f32.mxu0 %vm68_vm0, %v56_v5 }
  0x31   :  { %1878 = vmatmul.mubr.msk.f32.gmra.mrb[4].mxu0 %vm68_vm0, %v57_v6 }
  0x32   :  { %1880 = vmatprep.mubr.msk.f32.mxu0 %vm68_vm0, %v58_v7 }
  0x35   :  { %1881 = vmatmul.mubr.msk.f32.gmra.mrb[6].mxu0 %vm68_vm0, %v59_v8 }
  0xfc   :  { %v1873_v14 = vpop.f32.mrb[0].mxu0 }
  0xfd   :  { %v165_v15 = vadd.f32 %v1873_v14, %v67_v13  ;;  %v159_v16 = vpop.f32.mrb[1].mxu0 }
  0xfe   :  { %v160_v17 = vadd.f32 %v159_v16, %v67_v13 }
  0xff   :  { %v202_v18 = vsel %vm198_vm1, %v165_v15, 0.0 }
 0x100   :  { %203 = vadd.xlane.f32.xlu1 %v202_v18  ;;  %v1876_v19 = vpop.f32.mrb[2].mxu0  ;;  %v199_v20 = vsel %vm198_vm1, %v160_v17, 0.0  ;;  %v358_v18 = vld [vmem:[#allocation2 + $0x8] sm:$0xff] }
 0x101   :  { %v175_v21 = vadd.f32 %v1876_v19, %v67_v13  ;;  %v169_v22 = vpop.f32.mrb[3].mxu0  ;;  %200 = vadd.xlane.f32.xlu0 %v199_v20  ;;  %v359_v19 = vld [vmem:[#allocation2 + $0x10] sm:$0xff]  ;;  %v360_v20 = vld [vmem:[#allocation2 + $0x18] sm:$0xff] }
 0x102   :  { %v170_v23 = vadd.f32 %v169_v22, %v67_v13  ;;  %v361_v22 = vld [vmem:[#allocation2 + $0x20] sm:$0xff] }
 0x103   :  { %v208_v24 = vsel %vm198_vm1, %v175_v21, 0.0 }
 0x104   :  { %209 = vadd.xlane.f32.xlu1 %v208_v24  ;;  %v1879_v25 = vpop.f32.mrb[4].mxu0  ;;  %v205_v26 = vsel %vm198_vm1, %v170_v23, 0.0  ;;  %v362_v24 = vld [vmem:[#allocation2 + $0x28] sm:$0xff] }
 0x105   :  { %v185_v27 = vadd.f32 %v1879_v25, %v67_v13  ;;  %v179_v28 = vpop.f32.mrb[5].mxu0  ;;  %206 = vadd.xlane.f32.xlu0 %v205_v26  ;;  %v363_v25 = vld [vmem:[#allocation2 + $0x30] sm:$0xff] }
 0x106   :  { %v180_v29 = vadd.f32 %v179_v28, %v67_v13  ;;  %v2136_v26 = vpack.c.bf16 %v363_v25, %v362_v24  ;;  %v365_v28 = vld [vmem:[#allocation2 + $0x40] sm:$0xff] }
 0x107   :  { %v214_v30 = vsel %vm198_vm1, %v185_v27, 0.0 }
 0x108   :  { %215 = vadd.xlane.f32.xlu1 %v214_v30  ;;  %v1882_v31 = vpop.f32.mrb[6].mxu0  ;;  %v211_v32 = vsel %vm198_vm1, %v180_v29, 0.0  ;;  %v366_v30 = vld [vmem:[#allocation2 + $0x48] sm:$0xff] }
 0x109   :  { %v195_v33 = vadd.f32 %v1882_v31, %v67_v13  ;;  %v189_v34 = vpop.f32.mrb[7].mxu0  ;;  %212 = vadd.xlane.f32.xlu0 %v211_v32  ;;  %v367_v31 = vld [vmem:[#allocation2 + $0x50] sm:$0xff] }
 0x10a   :  { %v190_v35 = vadd.f32 %v189_v34, %v67_v13  ;;  %v2144_v32 = vpack.c.bf16 %v367_v31, %v366_v30  ;;  %v369_v34 = vld [vmem:[#allocation2 + $0x60] sm:$0xff] }
 0x10b   :  { %v220_v36 = vsel %vm198_vm1, %v195_v33, 0.0 }
 0x10c   :  { %221 = vadd.xlane.f32.xlu1 %v220_v36  ;;  %v217_v37 = vsel %vm198_vm1, %v190_v35, 0.0  ;;  %v370_v36 = vld [vmem:[#allocation2 + $0x68] sm:$0xff] }
 0x10d   :  { %218 = vadd.xlane.f32.xlu0 %v217_v37  ;;  %v371_v37 = vld [vmem:[#allocation2 + $0x70] sm:$0xff] }
 0x18d   :  { %v204_v38 = vpop.xlane.xlu1 %203 }
 0x18e   :  { %v225_v39 = vmul.f32 0.015625, %v204_v38  ;;  %v201_v40 = vpop.xlane.xlu0 %200  ;;  %v2152_v38 = vpack.c.bf16 %v371_v37, %v370_v36  ;;  %v373_v36 = vld [vmem:[#allocation2 + $0x80] sm:$0xff] }
 0x18f   :  { %v224_v41 = vmul.f32 0.015625, %v201_v40 }
 0x190   :  { %v2575_v42 = vsub.f32 %v165_v15, %v225_v39 }
 0x191   :  { %v2577_v43 = vsub.f32 %v160_v17, %v224_v41  ;;  %v210_v44 = vpop.xlane.xlu1 %209 }
 0x192   :  { %v227_v45 = vmul.f32 0.015625, %v210_v44  ;;  %v207_v46 = vpop.xlane.xlu0 %206  ;;  %v241_v47 = vmul.f32 %v2575_v42, %v2575_v42 }
 0x193   :  { %v226_v48 = vmul.f32 0.015625, %v207_v46  ;;  %v240_v51 = vmul.f32 %v2577_v43, %v2577_v43 }
 0x194   :  { %v2581_v49 = vsub.f32 %v175_v21, %v227_v45  ;;  %v251_v50 = vsel %vm198_vm1, %v241_v47, 0.0  ;;  %v2128_v21 = vpack.c.bf16 %v359_v19, %v358_v18 }
 0x195   :  { %v2586_v52 = vsub.f32 %v170_v23, %v226_v48  ;;  %v216_v53 = vpop.xlane.xlu1 %215  ;;  %252 = vadd.xlane.f32.xlu0 %v251_v50  ;;  %v248_v60 = vsel %vm198_vm1, %v240_v51, 0.0  ;;  %v2132_v23 = vpack.c.bf16 %v361_v22, %v360_v20 }
 0x196   :  { %v229_v54 = vmul.f32 0.015625, %v216_v53  ;;  %v213_v55 = vpop.xlane.xlu0 %212  ;;  %v243_v56 = vmul.f32 %v2581_v49, %v2581_v49  ;;  %2129 = vmatprep.subr.bf16.mxu1 %v2128_v21 }
 0x197   :  { %v228_v57 = vmul.f32 0.015625, %v213_v55  ;;  %v242_v61 = vmul.f32 %v2586_v52, %v2586_v52  ;;  %2131 = vmatpush3.bf16.msra.mxu1 %v2128_v21 }
 0x198   :  { %v2590_v58 = vsub.f32 %v185_v27, %v229_v54  ;;  %v257_v59 = vsel %vm198_vm1, %v243_v56, 0.0  ;;  %2133 = vmatprep.subr.bf16.mxu1 %v2132_v23  ;;  %v364_v27 = vld [vmem:[#allocation2 + $0x38] sm:$0xff] }
 0x199   :  { %v2596_v62 = vsub.f32 %v180_v29, %v228_v57  ;;  %258 = vadd.xlane.f32.xlu1 %v257_v59  ;;  %v222_v63 = vpop.xlane.xlu1 %221  ;;  %249 = vadd.xlane.f32.xlu0 %v248_v60  ;;  %v254_v5 = vsel %vm198_vm1, %v242_v61, 0.0  ;;  %v2140_v29 = vpack.c.bf16 %v365_v28, %v364_v27 }
 0x19a   :  { %v231_v0 = vmul.f32 0.015625, %v222_v63  ;;  %v219_v1 = vpop.xlane.xlu0 %218  ;;  %v245_v6 = vmul.f32 %v2590_v58, %v2590_v58 }
 0x19b   :  { %v230_v2 = vmul.f32 0.015625, %v219_v1  ;;  %v244_v3 = vmul.f32 %v2596_v62, %v2596_v62  ;;  %2135 = vmatpush3.bf16.msra.mxu1 %v2132_v23 }
 0x19c   :  { %v2600_v4 = vsub.f32 %v195_v33, %v231_v0  ;;  %v263_v14 = vsel %vm198_vm1, %v245_v6, 0.0  ;;  %2137 = vmatprep.subr.bf16.mxu1 %v2136_v26  ;;  %v368_v33 = vld [vmem:[#allocation2 + $0x58] sm:$0xff] }
 0x19d   :  { %v2605_v7 = vsub.f32 %v190_v35, %v230_v2  ;;  %255 = vadd.xlane.f32.xlu1 %v254_v5  ;;  %v260_v8 = vsel %vm198_vm1, %v244_v3, 0.0  ;;  %v2148_v35 = vpack.c.bf16 %v369_v34, %v368_v33  ;;  %v2616_v5 = vsub.s32 1, %v2555_v10 }
 0x19e   :  { %261 = vadd.xlane.f32.xlu0 %v260_v8  ;;  %v247_v15 = vmul.f32 %v2600_v4, %v2600_v4 }
 0x19f   :  { %v246_v13 = vmul.f32 %v2605_v7, %v2605_v7  ;;  %2139 = vmatpush3.bf16.msra.mxu1 %v2136_v26  ;;  %v307_v19 = vrot.slane %v2563_v12, %v2616_v5 }
 0x1a0   :  { %v269_v17 = vsel %vm198_vm1, %v247_v15, 0.0  ;;  %2141 = vmatprep.subr.bf16.mxu1 %v2140_v29 }
 0x1a1   :  { %264 = vadd.xlane.f32.xlu1 %v263_v14  ;;  %v266_v16 = vsel %vm198_vm1, %v246_v13, 0.0 }
 0x1a2   :  { %267 = vadd.xlane.f32.xlu0 %v266_v16  ;;  %v2620_v16 = vsub.s32 2, %v2555_v10 }
 0x1a3   :  { %2143 = vmatpush3.bf16.msra.mxu1 %v2140_v29 }
 0x1a4   :  { %2145 = vmatprep.subr.bf16.mxu1 %v2144_v32 }
 0x1a5   :  { %270 = vadd.xlane.f32.xlu1 %v269_v17 }
 0x1a7   :  { %2147 = vmatpush3.bf16.msra.mxu1 %v2144_v32 }
 0x1a8   :  { %2149 = vmatprep.subr.bf16.mxu1 %v2148_v35 }
 0x1ab   :  { %2151 = vmatpush3.bf16.msra.mxu1 %v2148_v35 }
 0x1ac   :  { %2153 = vmatprep.subr.bf16.mxu1 %v2152_v38 }
 0x1af   :  { %2155 = vmatpush3.bf16.msra.mxu1 %v2152_v38 }
 0x222   :  { %v253_v39 = vpop.xlane.xlu0 %252 }
 0x223   :  { %v273_v40 = vmul.f32 0.015625, %v253_v39 }
 0x225   :  { %v281_v41 = vadd.f32 1e-05, %v273_v40 }
 0x226   :  { %v259_v44 = vpop.xlane.xlu1 %258  ;;  %v250_v45 = vpop.xlane.xlu0 %249 }
 0x227   :  { %v275_v46 = vmul.f32 0.015625, %v259_v44  ;;  %v272_v47 = vmul.f32 0.015625, %v250_v45  ;;  %2322 = vrsqrt.f32 %v281_v41 }
 0x229   :  { %v283_v48 = vadd.f32 1e-05, %v275_v46  ;;  %v280_v50 = vadd.f32 1e-05, %v272_v47 }
 0x22a   :  { %v256_v51 = vpop.xlane.xlu1 %255 }
 0x22b   :  { %2324 = vrsqrt.f32 %v283_v48  ;;  %v274_v53 = vmul.f32 0.015625, %v256_v51  ;;  %v262_v54 = vpop.xlane.xlu0 %261 }
 0x22c   :  { %2326 = vrsqrt.f32 %v280_v50  ;;  %v276_v55 = vmul.f32 0.015625, %v262_v54 }
 0x22d   :  { %v282_v56 = vadd.f32 1e-05, %v274_v53 }
 0x22e   :  { %v284_v57 = vadd.f32 1e-05, %v276_v55  ;;  %v265_v59 = vpop.xlane.xlu1 %264 }
 0x22f   :  { %2328 = vrsqrt.f32 %v282_v56  ;;  %v277_v60 = vmul.f32 0.015625, %v265_v59  ;;  %v268_v61 = vpop.xlane.xlu0 %267 }
 0x230   :  { %2330 = vrsqrt.f32 %v284_v57  ;;  %v278_v63 = vmul.f32 0.015625, %v268_v61 }
 0x231   :  { %v285_v0 = vadd.f32 1e-05, %v277_v60  ;;  %v2323_v6 = vpop.eup %2322 }
 0x232   :  { %v286_v1 = vadd.f32 1e-05, %v278_v63  ;;  %v271_v2 = vpop.xlane.xlu1 %270  ;;  %v297_v17 = vmul.f32 %v2323_v6, %v2575_v42 }
 0x233   :  { %2332 = vrsqrt.f32 %v285_v0  ;;  %v279_v3 = vmul.f32 0.015625, %v271_v2 }
 0x234   :  { %2334 = vrsqrt.f32 %v286_v1  ;;  %v309_v26 = vmul.f32 %v307_v19, %v297_v17 }
 0x235   :  { %v2325_v8 = vpop.eup %2324  ;;  %v287_v13 = vadd.f32 1e-05, %v279_v3 }
 0x236   :  { %v2327_v14 = vpop.eup %2326  ;;  %v299_v15 = vmul.f32 %v2325_v8, %v2581_v49  ;;  %v319_v49 = vrot.slane %v2563_v12, %v2620_v16 }
 0x237   :  { %v296_v18 = vmul.f32 %v2327_v14, %v2577_v43  ;;  %2336 = vrsqrt.f32 %v287_v13 }
 0x238   :  { %v311_v22 = vmul.f32 %v307_v19, %v299_v15  ;;  %v321_v34 = vadd.f32 %v319_v49, %v309_v26 }
 0x239   :  { %v2329_v20 = vpop.eup %2328  ;;  %v308_v21 = vmul.f32 %v307_v19, %v296_v18  ;;  %v376_v18 = vsub.s32 3, %v2555_v10 }
 0x23a   :  { %v2331_v23 = vpop.eup %2330  ;;  %v298_v24 = vmul.f32 %v2329_v20, %v2586_v52  ;;  %v323_v29 = vadd.f32 %v319_v49, %v311_v22  ;;  %v372_v52 = vld [vmem:[#allocation2 + $0x78] sm:$0xff]  ;;  %v329_v50 = vmax.f32 %v321_v34, 0.0 }
 0x23b   :  { %v300_v25 = vmul.f32 %v2331_v23, %v2596_v62  ;;  %v320_v42 = vadd.f32 %v319_v49, %v308_v21  ;;  %v2156_v62 = vpack.c.bf16 %v373_v36, %v372_v52 }
 0x23c   :  { %v310_v27 = vmul.f32 %v307_v19, %v298_v24  ;;  %v331_v44 = vmax.f32 %v323_v29, 0.0 }
 0x23d   :  { %v2333_v28 = vpop.eup %2332  ;;  %v312_v43 = vmul.f32 %v307_v19, %v300_v25  ;;  %v328_v38 = vmax.f32 %v320_v42, 0.0  ;;  %2157 = vmatprep.subr.bf16.mxu1 %v2156_v62 }
 0x23e   :  { %v2335_v30 = vpop.eup %2334  ;;  %v301_v31 = vmul.f32 %v2333_v28, %v2590_v58  ;;  %v322_v32 = vadd.f32 %v319_v49, %v310_v27  ;;  %2159 = vmatpush3.bf16.msra.mxu1 %v2156_v62  ;;  %v337_v55 = vmax.f32 %v329_v50, %v331_v44 }
 0x23f   :  { %v302_v33 = vmul.f32 %v2335_v30, %v2605_v7  ;;  %v324_v35 = vadd.f32 %v319_v49, %v312_v43 }
 0x240   :  { %v313_v37 = vmul.f32 %v307_v19, %v301_v31  ;;  %v330_v39 = vmax.f32 %v322_v32, 0.0 }
 0x241   :  { %v2337_v40 = vpop.eup %2336  ;;  %v314_v41 = vmul.f32 %v307_v19, %v302_v33  ;;  %v332_v47 = vmax.f32 %v324_v35, 0.0 }
 0x242   :  { %v303_v45 = vmul.f32 %v2337_v40, %v2600_v4  ;;  %v325_v46 = vadd.f32 %v319_v49, %v313_v37  ;;  %v336_v48 = vmax.f32 %v328_v38, %v330_v39 }
 0x243   :  { %v326_v58 = vadd.f32 %v319_v49, %v314_v41 }
 0x244   :  { %v315_v7 = vmul.f32 %v307_v19, %v303_v45  ;;  %v333_v51 = vmax.f32 %v325_v46, 0.0  ;;  %v338_v56 = vmax.f32 %v336_v48, %v332_v47  ;;  %v377_v19 = vrot.slane %v2563_v12, %v376_v18 }
 0x245   :  { %v334_v54 = vmax.f32 %v326_v58, 0.0 }
 0x246   :  { %v327_v53 = vadd.f32 %v319_v49, %v315_v7  ;;  %v339_v59 = vmax.f32 %v337_v55, %v333_v51 }
 0x247   :  { %v340_v60 = vmax.f32 %v338_v56, %v334_v54 }
 0x248   :  { %v335_v57 = vmax.f32 %v327_v53, 0.0 }
 0x24a   :  { %v341_v61 = vmax.f32 %v339_v59, %v335_v57 }
 0x24c   :  { %v2307_v63 = vpack.i.bf16 %v341_v61, %v340_v60 }
 0x24e   :  { %2308 = vrot.lane.b32.xlu0 %v2307_v63, %s2457_s0 }
 0x2c0   :  { %v2309_v4 = vpop.permute.xlu0 %2308 }
 0x2c1   :  { %v2311_v0 = vunpack.i.h.bf16 %v2309_v4  ;;  %v2310_v1 = vunpack.i.l.bf16 %v2309_v4 }
 0x2c3   :  { %v350_v2 = vsel %vm198_vm1, %v328_v38, %v2310_v1  ;;  %v351_v3 = vsel %vm198_vm1, %v329_v50, %v2311_v0  ;;  %v352_v6 = vsel %vm198_vm1, %v330_v39, %v2310_v1  ;;  %v353_v8 = vsel %vm198_vm1, %v331_v44, %v2311_v0 }
 0x2c4   :  { %1915 = vmatprep.mubr.f32.mxu1 %v350_v2  ;;  %v354_v13 = vsel %vm198_vm1, %v332_v47, %v2310_v1  ;;  %v355_v14 = vsel %vm198_vm1, %v333_v51, %v2311_v0  ;;  %v356_v15 = vsel %vm198_vm1, %v334_v54, %v2310_v1  ;;  %v357_v17 = vsel %vm198_vm1, %v335_v57, %v2311_v0 }
 0x2c5   :  { %1916 = vmatmul.mubr.f32.vlgmr.msra.gmra.mrb[0].mxu1 %v351_v3 }
 0x2c6   :  { %1918 = vmatprep.mubr.f32.mxu1 %v352_v6 }
 0x2c9   :  { %1919 = vmatmul.mubr.f32.gmra.mrb[2].mxu1 %v353_v8 }
 0x2ca   :  { %1921 = vmatprep.mubr.f32.mxu1 %v354_v13 }
 0x2cd   :  { %1922 = vmatmul.mubr.f32.gmra.mrb[4].mxu1 %v355_v14 }
 0x2ce   :  { %1924 = vmatprep.mubr.f32.mxu1 %v356_v15 }
 0x2d1   :  { %1925 = vmatmul.mubr.f32.gmra.mrb[6].mxu1 %v357_v17 }
 0x398   :  { %v1917_v20 = vpop.f32.mrb[0].mxu1 }
 0x399   :  { %v450_v21 = vadd.f32 %v1917_v20, %v377_v19  ;;  %v444_v22 = vpop.f32.mrb[1].mxu1 }
 0x39a   :  { %v445_v23 = vadd.f32 %v444_v22, %v377_v19 }
 0x39b   :  { %v486_v24 = vsel %vm198_vm1, %v450_v21, 0.0 }
 0x39c   :  { %487 = vadd.xlane.f32.xlu1 %v486_v24  ;;  %v1920_v49 = vpop.f32.mrb[2].mxu1  ;;  %v483_v27 = vsel %vm198_vm1, %v445_v23, 0.0 }
 0x39d   :  { %v454_v25 = vpop.f32.mrb[3].mxu1  ;;  %v460_v26 = vadd.f32 %v1920_v49, %v377_v19 }
 0x39e   :  { %v455_v43 = vadd.f32 %v454_v25, %v377_v19 }
 0x39f   :  { %v492_v29 = vsel %vm198_vm1, %v460_v26, 0.0 }
 0x3a0   :  { %v1923_v42 = vpop.f32.mrb[4].mxu1  ;;  %484 = vadd.xlane.f32.xlu1 %v483_v27  ;;  %v489_v34 = vsel %vm198_vm1, %v455_v43, 0.0  ;;  %v642_v27 = vld [vmem:[#allocation2 + $0x90] sm:$0xff] }
 0x3a1   :  { %v464_v28 = vpop.f32.mrb[5].mxu1  ;;  %v470_v33 = vadd.f32 %v1923_v42, %v377_v19  ;;  %v643_v42 = vld [vmem:[#allocation2 + $0x98] sm:$0xff] }
 0x3a2   :  { %v465_v52 = vadd.f32 %v464_v28, %v377_v19 }
 0x3a3   :  { %v498_v36 = vsel %vm198_vm1, %v470_v33, 0.0 }
 0x3a4   :  { %v1926_v30 = vpop.f32.mrb[6].mxu1  ;;  %493 = vadd.xlane.f32.xlu1 %v492_v29  ;;  %v495_v38 = vsel %vm198_vm1, %v465_v52, 0.0 }
 0x3a5   :  { %v474_v31 = vpop.f32.mrb[7].mxu1  ;;  %v480_v37 = vadd.f32 %v1926_v30, %v377_v19  ;;  %v645_v30 = vld [vmem:[#allocation2 + $0xa8] sm:$0xff] }
 0x3a6   :  { %v475_v32 = vadd.f32 %v474_v31, %v377_v19  ;;  %v646_v31 = vld [vmem:[#allocation2 + $0xb0] sm:$0xff] }
 0x3a7   :  { %v504_v39 = vsel %vm198_vm1, %v480_v37, 0.0 }
 0x3a8   :  { %490 = vadd.xlane.f32.xlu1 %v489_v34  ;;  %v501_v35 = vsel %vm198_vm1, %v475_v32, 0.0  ;;  %v648_v34 = vld [vmem:[#allocation2 + $0xc0] sm:$0xff] }
 0x3a9   :  { %502 = vadd.xlane.f32.xlu0 %v501_v35 }
 0x3ac   :  { %499 = vadd.xlane.f32.xlu1 %v498_v36  ;;  %v650_v36 = vld [vmem:[#allocation2 + $0xd0] sm:$0xff] }
 0x3b0   :  { %496 = vadd.xlane.f32.xlu1 %v495_v38  ;;  %v651_v38 = vld [vmem:[#allocation2 + $0xd8] sm:$0xff] }
 0x3b4   :  { %505 = vadd.xlane.f32.xlu1 %v504_v39  ;;  %v652_v39 = vld [vmem:[#allocation2 + $0xe0] sm:$0xff] }
 0x429   :  { %v488_v62 = vpop.xlane.xlu1 %487 }
 0x42a   :  { %v508_v40 = vmul.f32 0.015625, %v488_v62  ;;  %v2180_v62 = vpack.c.bf16 %v652_v39, %v651_v38  ;;  %v655_v39 = vld [vmem:[#allocation2 + $0xf8] sm:$0xff] }
 0x42c   :  { %v2654_v41 = vsub.f32 %v450_v21, %v508_v40  ;;  %v653_v40 = vld [vmem:[#allocation2 + $0xe8] sm:$0xff] }
 0x42d   :  { %v485_v44 = vpop.xlane.xlu1 %484 }
 0x42e   :  { %v507_v45 = vmul.f32 0.015625, %v485_v44  ;;  %v524_v46 = vmul.f32 %v2654_v41, %v2654_v41  ;;  %v654_v44 = vld [vmem:[#allocation2 + $0xf0] sm:$0xff] }
 0x430   :  { %v2658_v47 = vsub.f32 %v445_v23, %v507_v45  ;;  %v534_v48 = vsel %vm198_vm1, %v524_v46, 0.0  ;;  %v2184_v45 = vpack.c.bf16 %v654_v44, %v653_v40 }
 0x431   :  { %535 = vadd.xlane.f32.xlu1 %v534_v48  ;;  %v494_v58 = vpop.xlane.xlu1 %493 }
 0x432   :  { %v510_v7 = vmul.f32 0.015625, %v494_v58  ;;  %v523_v50 = vmul.f32 %v2658_v47, %v2658_v47 }
 0x434   :  { %v2663_v51 = vsub.f32 %v460_v26, %v510_v7  ;;  %v531_v53 = vsel %vm198_vm1, %v523_v50, 0.0  ;;  %v641_v26 = vld [vmem:[#allocation2 + $0x88] sm:$0xff] }
 0x435   :  { %532 = vadd.xlane.f32.xlu1 %v531_v53  ;;  %v491_v54 = vpop.xlane.xlu1 %490  ;;  %v2160_v28 = vpack.c.bf16 %v642_v27, %v641_v26 }
 0x436   :  { %v509_v55 = vmul.f32 0.015625, %v491_v54  ;;  %v526_v56 = vmul.f32 %v2663_v51, %v2663_v51  ;;  %v503_v60 = vpop.xlane.xlu0 %502 }
 0x437   :  { %v513_v0 = vmul.f32 0.015625, %v503_v60  ;;  %2161 = vmatprep.subr.bf16.mxu0 %v2160_v28 }
 0x438   :  { %v2668_v57 = vsub.f32 %v455_v43, %v509_v55  ;;  %v540_v59 = vsel %vm198_vm1, %v526_v56, 0.0  ;;  %v644_v43 = vld [vmem:[#allocation2 + $0xa0] sm:$0xff]  ;;  %2163 = vmatpush3.bf16.msra.mxu0 %v2160_v28 }
 0x439   :  { %541 = vadd.xlane.f32.xlu1 %v540_v59  ;;  %v500_v61 = vpop.xlane.xlu1 %499  ;;  %v2678_v13 = vsub.f32 %v475_v32, %v513_v0  ;;  %v2164_v29 = vpack.c.bf16 %v644_v43, %v643_v42  ;;  %v2168_v32 = vpack.c.bf16 %v646_v31, %v645_v30 }
 0x43a   :  { %v512_v63 = vmul.f32 0.015625, %v500_v61  ;;  %v525_v4 = vmul.f32 %v2668_v57, %v2668_v57 }
 0x43b   :  { %v529_v23 = vmul.f32 %v2678_v13, %v2678_v13  ;;  %2165 = vmatprep.subr.bf16.mxu0 %v2164_v29 }
 0x43c   :  { %v2673_v1 = vsub.f32 %v470_v33, %v512_v63  ;;  %v537_v2 = vsel %vm198_vm1, %v525_v4, 0.0  ;;  %v647_v33 = vld [vmem:[#allocation2 + $0xb8] sm:$0xff]  ;;  %2167 = vmatpush3.bf16.msra.mxu0 %v2164_v29  ;;  %v601_v29 = vsub.s32 5, %v2555_v10 }
 0x43d   :  { %538 = vadd.xlane.f32.xlu1 %v537_v2  ;;  %v497_v3 = vpop.xlane.xlu1 %496  ;;  %v549_v49 = vsel %vm198_vm1, %v529_v23, 0.0  ;;  %2169 = vmatprep.subr.bf16.mxu0 %v2168_v32  ;;  %v2172_v35 = vpack.c.bf16 %v648_v34, %v647_v33  ;;  %v589_v23 = vsub.s32 4, %v2555_v10 }
 0x43e   :  { %v511_v6 = vmul.f32 0.015625, %v497_v3  ;;  %v528_v8 = vmul.f32 %v2673_v1, %v2673_v1 }
 0x43f   :  { %v590_v43 = vrot.slane %v2563_v12, %v589_v23 }
 0x440   :  { %v2680_v14 = vsub.f32 %v465_v52, %v511_v6  ;;  %v546_v15 = vsel %vm198_vm1, %v528_v8, 0.0  ;;  %v649_v52 = vld [vmem:[#allocation2 + $0xc8] sm:$0xff]  ;;  %2171 = vmatpush3.bf16.msra.mxu0 %v2168_v32 }
 0x441   :  { %547 = vadd.xlane.f32.xlu1 %v546_v15  ;;  %v506_v17 = vpop.xlane.xlu1 %505  ;;  %2173 = vmatprep.subr.bf16.mxu0 %v2172_v35 }
 0x442   :  { %v514_v19 = vmul.f32 0.015625, %v506_v17  ;;  %v527_v20 = vmul.f32 %v2680_v14, %v2680_v14 }
 0x444   :  { %v2685_v21 = vsub.f32 %v480_v37, %v514_v19  ;;  %v543_v22 = vsel %vm198_vm1, %v527_v20, 0.0  ;;  %v2176_v37 = vpack.c.bf16 %v650_v36, %v649_v52  ;;  %2175 = vmatpush3.bf16.msra.mxu0 %v2172_v35 }
 0x445   :  { %544 = vadd.xlane.f32.xlu1 %v543_v22 }
 0x446   :  { %v530_v24 = vmul.f32 %v2685_v21, %v2685_v21  ;;  %2177 = vmatprep.subr.bf16.mxu0 %v2176_v37 }
 0x448   :  { %v552_v25 = vsel %vm198_vm1, %v530_v24, 0.0  ;;  %2179 = vmatpush3.bf16.msra.mxu0 %v2176_v37 }
 0x449   :  { %550 = vadd.xlane.f32.xlu1 %v549_v49  ;;  %553 = vadd.xlane.f32.xlu0 %v552_v25 }
 0x44a   :  { %2181 = vmatprep.subr.bf16.mxu0 %v2180_v62 }
 0x44c   :  { %2183 = vmatpush3.bf16.msra.mxu0 %v2180_v62  ;;  %v656_v62 = vld [vmem:[#allocation2 + $0x100] sm:$0xff] }
 0x44d   :  { %2185 = vmatprep.subr.bf16.mxu0 %v2184_v45 }
 0x450   :  { %2187 = vmatpush3.bf16.msra.mxu0 %v2184_v45 }
 0x4be   :  { %v536_v46 = vpop.xlane.xlu1 %535 }
 0x4bf   :  { %v556_v58 = vmul.f32 0.015625, %v536_v46 }
 0x4c1   :  { %v564_v55 = vadd.f32 1e-05, %v556_v58 }
 0x4c2   :  { %v533_v48 = vpop.xlane.xlu1 %532 }
 0x4c3   :  { %v555_v53 = vmul.f32 0.015625, %v533_v48 }
 0x4c5   :  { %v563_v60 = vadd.f32 1e-05, %v555_v53 }
 0x4c6   :  { %v542_v7 = vpop.xlane.xlu1 %541 }
 0x4c7   :  { %v558_v50 = vmul.f32 0.015625, %v542_v7 }
 0x4c9   :  { %v566_v54 = vadd.f32 1e-05, %v558_v50 }
 0x4ca   :  { %v539_v56 = vpop.xlane.xlu1 %538 }
 0x4cb   :  { %v557_v59 = vmul.f32 0.015625, %v539_v56  ;;  %2338 = vrsqrt.f32 %v566_v54 }
 0x4cc   :  { %2340 = vrsqrt.f32 %v564_v55 }
 0x4cd   :  { %v565_v61 = vadd.f32 1e-05, %v557_v59 }
 0x4ce   :  { %v548_v63 = vpop.xlane.xlu1 %547 }
 0x4cf   :  { %2342 = vrsqrt.f32 %v565_v61  ;;  %v560_v4 = vmul.f32 0.015625, %v548_v63 }
 0x4d0   :  { %2344 = vrsqrt.f32 %v563_v60 }
 0x4d1   :  { %v568_v0 = vadd.f32 1e-05, %v560_v4 }
 0x4d2   :  { %v545_v2 = vpop.xlane.xlu1 %544 }
 0x4d3   :  { %2346 = vrsqrt.f32 %v568_v0  ;;  %v559_v3 = vmul.f32 0.015625, %v545_v2 }
 0x4d5   :  { %v567_v6 = vadd.f32 1e-05, %v559_v3  ;;  %v2339_v17 = vpop.eup %2338 }
 0x4d6   :  { %v554_v8 = vpop.xlane.xlu0 %553  ;;  %v551_v15 = vpop.xlane.xlu1 %550  ;;  %v582_v27 = vmul.f32 %v2339_v17, %v2663_v51 }
 0x4d7   :  { %2348 = vrsqrt.f32 %v567_v6  ;;  %v562_v19 = vmul.f32 0.015625, %v554_v8  ;;  %v561_v20 = vmul.f32 0.015625, %v551_v15  ;;  %v2341_v22 = vpop.eup %2340 }
 0x4d8   :  { %v580_v28 = vmul.f32 %v2341_v22, %v2654_v41  ;;  %v594_v33 = vmul.f32 %v590_v43, %v582_v27 }
 0x4d9   :  { %v2343_v24 = vpop.eup %2342  ;;  %v570_v49 = vadd.f32 1e-05, %v562_v19  ;;  %v569_v25 = vadd.f32 1e-05, %v561_v20 }
 0x4da   :  { %v2345_v26 = vpop.eup %2344  ;;  %v581_v42 = vmul.f32 %v2343_v24, %v2668_v57  ;;  %v592_v51 = vmul.f32 %v590_v43, %v580_v28  ;;  %v602_v57 = vrot.slane %v2563_v12, %v601_v29  ;;  %v659_v29 = vsub.s32 6, %v2555_v10 }
 0x4db   :  { %2350 = vrsqrt.f32 %v570_v49  ;;  %v579_v31 = vmul.f32 %v2345_v26, %v2658_v47  ;;  %v2188_v47 = vpack.c.bf16 %v656_v62, %v655_v39 }
 0x4dc   :  { %2352 = vrsqrt.f32 %v569_v25  ;;  %v593_v34 = vmul.f32 %v590_v43, %v581_v42  ;;  %v606_v37 = vadd.f32 %v602_v57, %v594_v33  ;;  %v604_v44 = vadd.f32 %v602_v57, %v592_v51 }
 0x4dd   :  { %v2347_v30 = vpop.eup %2346  ;;  %v591_v41 = vmul.f32 %v590_v43, %v579_v31  ;;  %2189 = vmatprep.subr.bf16.mxu0 %v2188_v47 }
 0x4de   :  { %v584_v32 = vmul.f32 %v2347_v30, %v2673_v1  ;;  %v605_v38 = vadd.f32 %v602_v57, %v593_v34  ;;  %v614_v50 = vmax.f32 %v606_v37, 0.0  ;;  %2191 = vmatpush3.bf16.msra.mxu0 %v2188_v47  ;;  %v612_v55 = vmax.f32 %v604_v44, 0.0 }
 0x4df   :  { %v603_v1 = vadd.f32 %v602_v57, %v591_v41  ;;  %v660_v30 = vrot.slane %v2563_v12, %v659_v29 }
 0x4e0   :  { %v596_v35 = vmul.f32 %v590_v43, %v584_v32  ;;  %v613_v54 = vmax.f32 %v605_v38, 0.0  ;;  %v620_v4 = vmax.f32 %v612_v55, %v614_v50 }
 0x4e1   :  { %v2349_v52 = vpop.eup %2348  ;;  %v611_v60 = vmax.f32 %v603_v1, 0.0 }
 0x4e2   :  { %v583_v36 = vmul.f32 %v2349_v52, %v2680_v14  ;;  %v608_v45 = vadd.f32 %v602_v57, %v596_v35 }
 0x4e3   :  { %v619_v2 = vmax.f32 %v611_v60, %v613_v54 }
 0x4e4   :  { %v595_v40 = vmul.f32 %v590_v43, %v583_v36  ;;  %v616_v56 = vmax.f32 %v608_v45, 0.0 }
 0x4e5   :  { %v2351_v46 = vpop.eup %2350 }
 0x4e6   :  { %v2353_v48 = vpop.eup %2352  ;;  %v586_v58 = vmul.f32 %v2351_v46, %v2685_v21  ;;  %v607_v7 = vadd.f32 %v602_v57, %v595_v40  ;;  %v622_v6 = vmax.f32 %v620_v4, %v616_v56 }
 0x4e7   :  { %v585_v53 = vmul.f32 %v2353_v48, %v2678_v13 }
 0x4e8   :  { %v598_v14 = vmul.f32 %v590_v43, %v586_v58  ;;  %v615_v61 = vmax.f32 %v607_v7, 0.0 }
 0x4e9   :  { %v597_v59 = vmul.f32 %v590_v43, %v585_v53 }
 0x4ea   :  { %v610_v63 = vadd.f32 %v602_v57, %v598_v14  ;;  %v621_v8 = vmax.f32 %v619_v2, %v615_v61 }
 0x4eb   :  { %v609_v0 = vadd.f32 %v602_v57, %v597_v59 }
 0x4ec   :  { %v618_v3 = vmax.f32 %v610_v63, 0.0 }
 0x4ed   :  { %v617_v21 = vmax.f32 %v609_v0, 0.0 }
 0x4ee   :  { %v624_v15 = vmax.f32 %v622_v6, %v618_v3 }
 0x4ef   :  { %v623_v17 = vmax.f32 %v621_v8, %v617_v21 }
 0x4f1   :  { %v2312_v19 = vpack.i.bf16 %v624_v15, %v623_v17 }
 0x4f3   :  { %2313 = vrot.lane.b32.xlu1 %v2312_v19, %s2457_s0 }
 0x565   :  { %v2314_v13 = vpop.permute.xlu1 %2313 }
 0x566   :  { %v2316_v20 = vunpack.i.h.bf16 %v2314_v13  ;;  %v2315_v22 = vunpack.i.l.bf16 %v2314_v13 }
 0x568   :  { %v633_v24 = vsel %vm198_vm1, %v611_v60, %v2315_v22  ;;  %v634_v49 = vsel %vm198_vm1, %v612_v55, %v2316_v20  ;;  %v635_v25 = vsel %vm198_vm1, %v613_v54, %v2315_v22  ;;  %v636_v26 = vsel %vm198_vm1, %v614_v50, %v2316_v20 }
 0x569   :  { %1959 = vmatprep.mubr.f32.mxu0 %v633_v24  ;;  %v637_v27 = vsel %vm198_vm1, %v615_v61, %v2315_v22  ;;  %v638_v42 = vsel %vm198_vm1, %v616_v56, %v2316_v20  ;;  %v639_v28 = vsel %vm198_vm1, %v617_v21, %v2315_v22  ;;  %v640_v43 = vsel %vm198_vm1, %v618_v3, %v2316_v20 }
 0x56a   :  { %1960 = vmatmul.mubr.f32.vlgmr.msra.gmra.mrb[8].mxu0 %v634_v49 }
 0x56b   :  { %1962 = vmatprep.mubr.f32.mxu0 %v635_v25 }
 0x56e   :  { %1963 = vmatmul.mubr.f32.gmra.mrb[10].mxu0 %v636_v26 }
 0x56f   :  { %1965 = vmatprep.mubr.f32.mxu0 %v637_v27 }
 0x572   :  { %1966 = vmatmul.mubr.f32.gmra.mrb[12].mxu0 %v638_v42 }
 0x573   :  { %1968 = vmatprep.mubr.f32.mxu0 %v639_v28 }
 0x576   :  { %1969 = vmatmul.mubr.f32.gmra.mrb[14].mxu0 %v640_v43 }
 0x63d   :  { %v1961_v31 = vpop.f32.mrb[8].mxu0 }
 0x63e   :  { %v733_v32 = vadd.f32 %v1961_v31, %v660_v30  ;;  %v727_v33 = vpop.f32.mrb[9].mxu0 }
 0x63f   :  { %v728_v34 = vadd.f32 %v727_v33, %v660_v30 }
 0x640   :  { %v769_v51 = vsel %vm198_vm1, %v733_v32, 0.0 }
 0x641   :  { %770 = vadd.xlane.f32.xlu0 %v769_v51  ;;  %v1964_v35 = vpop.f32.mrb[10].mxu0  ;;  %v766_v41 = vsel %vm198_vm1, %v728_v34, 0.0 }
 0x642   :  { %v737_v57 = vpop.f32.mrb[11].mxu0  ;;  %v743_v52 = vadd.f32 %v1964_v35, %v660_v30 }
 0x643   :  { %v738_v39 = vadd.f32 %v737_v57, %v660_v30 }
 0x644   :  { %v775_v12 = vsel %vm198_vm1, %v743_v52, 0.0 }
 0x645   :  { %v1967_v36 = vpop.f32.mrb[12].mxu0  ;;  %767 = vadd.xlane.f32.xlu0 %v766_v41  ;;  %v772_v47 = vsel %vm198_vm1, %v738_v39, 0.0  ;;  %v925_v41 = vld [vmem:[#allocation2 + $0x110] sm:$0xff] }
 0x646   :  { %v753_v37 = vadd.f32 %v1967_v36, %v660_v30  ;;  %v747_v38 = vpop.f32.mrb[13].mxu0  ;;  %v926_v36 = vld [vmem:[#allocation2 + $0x118] sm:$0xff] }
 0x647   :  { %v748_v45 = vadd.f32 %v747_v38, %v660_v30  ;;  %v927_v38 = vld [vmem:[#allocation2 + $0x120] sm:$0xff] }
 0x648   :  { %v781_v62 = vsel %vm198_vm1, %v753_v37, 0.0 }
 0x649   :  { %782 = vadd.xlane.f32.xlu1 %v781_v62  ;;  %v1970_v40 = vpop.f32.mrb[14].mxu0  ;;  %776 = vadd.xlane.f32.xlu0 %v775_v12  ;;  %v778_v1 = vsel %vm198_vm1, %v748_v45, 0.0  ;;  %v928_v62 = vld [vmem:[#allocation2 + $0x128] sm:$0xff]  ;;  %v929_v12 = vld [vmem:[#allocation2 + $0x130] sm:$0xff] }
 0x64a   :  { %v757_v44 = vpop.f32.mrb[15].mxu0  ;;  %v763_v48 = vadd.f32 %v1970_v40, %v660_v30  ;;  %v2200_v40 = vpack.c.bf16 %v929_v12, %v928_v62 }
 0x64b   :  { %v758_v46 = vadd.f32 %v757_v44, %v660_v30  ;;  %v930_v44 = vld [vmem:[#allocation2 + $0x138] sm:$0xff] }
 0x64c   :  { %v787_v7 = vsel %vm198_vm1, %v763_v48, 0.0 }
 0x64d   :  { %773 = vadd.xlane.f32.xlu0 %v772_v47  ;;  %v784_v58 = vsel %vm198_vm1, %v758_v46, 0.0 }
 0x651   :  { %779 = vadd.xlane.f32.xlu0 %v778_v1  ;;  %v933_v1 = vld [vmem:[#allocation2 + $0x150] sm:$0xff] }
 0x655   :  { %785 = vadd.xlane.f32.xlu0 %v784_v58  ;;  %v934_v58 = vld [vmem:[#allocation2 + $0x158] sm:$0xff] }
 0x659   :  { %788 = vadd.xlane.f32.xlu0 %v787_v7  ;;  %v935_v7 = vld [vmem:[#allocation2 + $0x160] sm:$0xff] }
 0x6ce   :  { %v771_v50 = vpop.xlane.xlu0 %770 }
 0x6cf   :  { %v791_v53 = vmul.f32 0.015625, %v771_v50  ;;  %v2212_v50 = vpack.c.bf16 %v935_v7, %v934_v58  ;;  %v938_v7 = vld [vmem:[#allocation2 + $0x178] sm:$0xff] }
 0x6d1   :  { %v2727_v54 = vsub.f32 %v733_v32, %v791_v53  ;;  %v936_v53 = vld [vmem:[#allocation2 + $0x168] sm:$0xff] }
 0x6d2   :  { %v768_v14 = vpop.xlane.xlu0 %767 }
 0x6d3   :  { %v790_v55 = vmul.f32 0.015625, %v768_v14  ;;  %v807_v56 = vmul.f32 %v2727_v54, %v2727_v54  ;;  %v937_v14 = vld [vmem:[#allocation2 + $0x170] sm:$0xff] }
 0x6d5   :  { %v2731_v59 = vsub.f32 %v728_v34, %v790_v55  ;;  %v817_v60 = vsel %vm198_vm1, %v807_v56, 0.0  ;;  %v2216_v55 = vpack.c.bf16 %v937_v14, %v936_v53 }
 0x6d6   :  { %v783_v61 = vpop.xlane.xlu1 %782  ;;  %818 = vadd.xlane.f32.xlu0 %v817_v60  ;;  %v777_v63 = vpop.xlane.xlu0 %776 }
 0x6d7   :  { %v793_v4 = vmul.f32 0.015625, %v777_v63  ;;  %v806_v0 = vmul.f32 %v2731_v59, %v2731_v59  ;;  %v795_v2 = vmul.f32 0.015625, %v783_v61 }
 0x6d9   :  { %v2736_v3 = vsub.f32 %v743_v52, %v793_v4  ;;  %v814_v6 = vsel %vm198_vm1, %v806_v0, 0.0  ;;  %v2741_v17 = vsub.f32 %v753_v37, %v795_v2  ;;  %v924_v52 = vld [vmem:[#allocation2 + $0x108] sm:$0xff] }
 0x6da   :  { %815 = vadd.xlane.f32.xlu0 %v814_v6  ;;  %v774_v21 = vpop.xlane.xlu0 %773  ;;  %v2192_v37 = vpack.c.bf16 %v925_v41, %v924_v52 }
 0x6db   :  { %v792_v8 = vmul.f32 0.015625, %v774_v21  ;;  %v809_v15 = vmul.f32 %v2736_v3, %v2736_v3  ;;  %v811_v26 = vmul.f32 %v2741_v17, %v2741_v17 }
 0x6dc   :  { %2193 = vmatprep.subr.bf16.mxu1 %v2192_v37 }
 0x6dd   :  { %v2743_v19 = vsub.f32 %v738_v39, %v792_v8  ;;  %v823_v13 = vsel %vm198_vm1, %v809_v15, 0.0  ;;  %v829_v43 = vsel %vm198_vm1, %v811_v26, 0.0  ;;  %v2196_v39 = vpack.c.bf16 %v927_v38, %v926_v36  ;;  %2195 = vmatpush3.bf16.msra.mxu1 %v2192_v37  ;;  %v2380_v38 = vld [vmem:[%s2887_s4] sm:$0xff] }
 0x6de   :  { %824 = vadd.xlane.f32.xlu0 %v823_v13  ;;  %v780_v20 = vpop.xlane.xlu0 %779 }
 0x6df   :  { %v794_v22 = vmul.f32 0.015625, %v780_v20  ;;  %v808_v24 = vmul.f32 %v2743_v19, %v2743_v19  ;;  %2197 = vmatprep.subr.bf16.mxu1 %v2196_v39 }
 0x6e1   :  { %v2748_v49 = vsub.f32 %v748_v45, %v794_v22  ;;  %v820_v25 = vsel %vm198_vm1, %v808_v24, 0.0  ;;  %v931_v45 = vld [vmem:[#allocation2 + $0x140] sm:$0xff]  ;;  %2199 = vmatpush3.bf16.msra.mxu1 %v2196_v39 }
 0x6e2   :  { %821 = vadd.xlane.f32.xlu0 %v820_v25  ;;  %v786_v27 = vpop.xlane.xlu0 %785  ;;  %2201 = vmatprep.subr.bf16.mxu1 %v2200_v40  ;;  %v2204_v47 = vpack.c.bf16 %v931_v45, %v930_v44 }
 0x6e3   :  { %v796_v42 = vmul.f32 0.015625, %v786_v27  ;;  %v810_v29 = vmul.f32 %v2748_v49, %v2748_v49 }
 0x6e5   :  { %v2753_v28 = vsub.f32 %v758_v46, %v796_v42  ;;  %v826_v33 = vsel %vm198_vm1, %v810_v29, 0.0  ;;  %v932_v46 = vld [vmem:[#allocation2 + $0x148] sm:$0xff]  ;;  %2203 = vmatpush3.bf16.msra.mxu1 %v2200_v40 }
 0x6e6   :  { %830 = vadd.xlane.f32.xlu0 %v829_v43  ;;  %v789_v30 = vpop.xlane.xlu0 %788  ;;  %2205 = vmatprep.subr.bf16.mxu1 %v2204_v47  ;;  %v2778_v40 = vld [vmem:[%s2887_s4 + $0x8] sm:$0xff] }
 0x6e7   :  { %v797_v31 = vmul.f32 0.015625, %v789_v30  ;;  %v812_v34 = vmul.f32 %v2753_v28, %v2753_v28 }
 0x6e9   :  { %v2758_v32 = vsub.f32 %v763_v48, %v797_v31  ;;  %v832_v35 = vsel %vm198_vm1, %v812_v34, 0.0  ;;  %v2208_v48 = vpack.c.bf16 %v933_v1, %v932_v46  ;;  %2207 = vmatpush3.bf16.msra.mxu1 %v2204_v47  ;;  %v872_v34 = vsub.s32 7, %v2555_v10 }
 0x6ea   :  { %827 = vadd.xlane.f32.xlu0 %v826_v33  ;;  %v885_v47 = vrot.slane %v2778_v40, %v2558_v11 }
 0x6eb   :  { %v813_v51 = vmul.f32 %v2758_v32, %v2758_v32  ;;  %2209 = vmatprep.subr.bf16.mxu1 %v2208_v48  ;;  %v873_v39 = vrot.slane %v2380_v38, %v872_v34 }
 0x6ed   :  { %v835_v57 = vsel %vm198_vm1, %v813_v51, 0.0  ;;  %2211 = vmatpush3.bf16.msra.mxu1 %v2208_v48 }
 0x6ee   :  { %833 = vadd.xlane.f32.xlu0 %v832_v35  ;;  %836 = vadd.xlane.f32.xlu1 %v835_v57 }
 0x6ef   :  { %2213 = vmatprep.subr.bf16.mxu1 %v2212_v50 }
 0x6f1   :  { %2215 = vmatpush3.bf16.msra.mxu1 %v2212_v50  ;;  %v939_v50 = vld [vmem:[#allocation2 + $0x180] sm:$0xff] }
 0x6f2   :  { %2217 = vmatprep.subr.bf16.mxu1 %v2216_v55 }
 0x6f5   :  { %2219 = vmatpush3.bf16.msra.mxu1 %v2216_v55 }
 0x763   :  { %v819_v56 = vpop.xlane.xlu0 %818 }
 0x764   :  { %v839_v61 = vmul.f32 0.015625, %v819_v56  ;;  %v2220_v56 = vpack.c.bf16 %v939_v50, %v938_v7 }
 0x766   :  { %v847_v6 = vadd.f32 1e-05, %v839_v61  ;;  %2221 = vmatprep.subr.bf16.mxu1 %v2220_v56 }
 0x767   :  { %v816_v60 = vpop.xlane.xlu0 %815  ;;  %2223 = vmatpush3.bf16.msra.mxu1 %v2220_v56 }
 0x768   :  { %v838_v0 = vmul.f32 0.015625, %v816_v60 }
 0x76a   :  { %v846_v15 = vadd.f32 1e-05, %v838_v0 }
 0x76b   :  { %v825_v63 = vpop.xlane.xlu0 %824 }
 0x76c   :  { %v841_v4 = vmul.f32 0.015625, %v825_v63 }
 0x76e   :  { %v849_v2 = vadd.f32 1e-05, %v841_v4 }
 0x76f   :  { %v822_v21 = vpop.xlane.xlu0 %821 }
 0x770   :  { %v840_v8 = vmul.f32 0.015625, %v822_v21  ;;  %2354 = vrsqrt.f32 %v849_v2 }
 0x771   :  { %2356 = vrsqrt.f32 %v847_v6 }
 0x772   :  { %v848_v13 = vadd.f32 1e-05, %v840_v8 }
 0x773   :  { %v831_v20 = vpop.xlane.xlu0 %830 }
 0x774   :  { %2358 = vrsqrt.f32 %v848_v13  ;;  %v843_v22 = vmul.f32 0.015625, %v831_v20 }
 0x775   :  { %2360 = vrsqrt.f32 %v846_v15 }
 0x776   :  { %v851_v24 = vadd.f32 1e-05, %v843_v22 }
 0x777   :  { %v828_v25 = vpop.xlane.xlu0 %827 }
 0x778   :  { %2362 = vrsqrt.f32 %v851_v24  ;;  %v842_v26 = vmul.f32 0.015625, %v828_v25 }
 0x77a   :  { %v850_v27 = vadd.f32 1e-05, %v842_v26  ;;  %v2355_v29 = vpop.eup %2354 }
 0x77b   :  { %v837_v42 = vpop.xlane.xlu1 %836  ;;  %v834_v43 = vpop.xlane.xlu0 %833  ;;  %v865_v41 = vmul.f32 %v2355_v29, %v2736_v3 }
 0x77c   :  { %2364 = vrsqrt.f32 %v850_v27  ;;  %v845_v30 = vmul.f32 0.015625, %v837_v42  ;;  %v844_v31 = vmul.f32 0.015625, %v834_v43  ;;  %v2357_v33 = vpop.eup %2356 }
 0x77d   :  { %v863_v37 = vmul.f32 %v2357_v33, %v2727_v54 }
 0x77e   :  { %v2359_v51 = vpop.eup %2358  ;;  %v853_v35 = vadd.f32 1e-05, %v845_v30  ;;  %v852_v57 = vadd.f32 1e-05, %v844_v31 }
 0x77f   :  { %v2361_v52 = vpop.eup %2360  ;;  %v864_v36 = vmul.f32 %v2359_v51, %v2743_v19  ;;  %v877_v19 = vmul.f32 %v873_v39, %v865_v41  ;;  %v875_v45 = vmul.f32 %v873_v39, %v863_v37 }
 0x780   :  { %2366 = vrsqrt.f32 %v853_v35  ;;  %v862_v12 = vmul.f32 %v2361_v52, %v2731_v59 }
 0x781   :  { %2368 = vrsqrt.f32 %v852_v57  ;;  %v876_v44 = vmul.f32 %v873_v39, %v864_v36  ;;  %v889_v58 = vadd.f32 %v885_v47, %v877_v19  ;;  %v887_v14 = vadd.f32 %v885_v47, %v875_v45 }
 0x782   :  { %v2363_v62 = vpop.eup %2362  ;;  %v874_v1 = vmul.f32 %v873_v39, %v862_v12 }
 0x783   :  { %v867_v3 = vmul.f32 %v2363_v62, %v2741_v17  ;;  %v888_v59 = vadd.f32 %v885_v47, %v876_v44  ;;  %v897_v0 = vmax.f32 %v889_v58, 0.0  ;;  %v895_v21 = vmax.f32 %v887_v14, 0.0 }
 0x784   :  { %v886_v60 = vadd.f32 %v885_v47, %v874_v1 }
 0x785   :  { %v879_v54 = vmul.f32 %v873_v39, %v867_v3  ;;  %v896_v6 = vmax.f32 %v888_v59, 0.0  ;;  %v903_v24 = vmax.f32 %v895_v21, %v897_v0 }
 0x786   :  { %v2365_v46 = vpop.eup %2364  ;;  %v894_v13 = vmax.f32 %v886_v60, 0.0  ;;  %v1071_v60 = vld [vmem:[#allocation5] sm:$0xff] }
 0x787   :  { %v866_v48 = vmul.f32 %v2365_v46, %v2748_v49  ;;  %v891_v55 = vadd.f32 %v885_v47, %v879_v54 }
 0x788   :  { %v902_v26 = vmax.f32 %v894_v13, %v896_v6 }
 0x789   :  { %v878_v53 = vmul.f32 %v873_v39, %v866_v48  ;;  %v899_v8 = vmax.f32 %v891_v55, 0.0  ;;  %v1054_v48 = vrot.slane %v2778_v40, %v2616_v5 }
 0x78a   :  { %v2367_v17 = vpop.eup %2366 }
 0x78b   :  { %v2369_v61 = vpop.eup %2368  ;;  %v869_v63 = vmul.f32 %v2367_v17, %v2758_v32  ;;  %v890_v4 = vadd.f32 %v885_v47, %v878_v53  ;;  %v905_v42 = vmax.f32 %v903_v24, %v899_v8  ;;  %v1246_v24 = vld [vmem:[#allocation5 + $0x40] sm:$0xff] }
 0x78c   :  { %v868_v2 = vmul.f32 %v2369_v61, %v2753_v28  ;;  %v1072_v61 = vld [vmem:[#allocation5 + $0x8] sm:$0xff] }
 0x78d   :  { %v881_v49 = vmul.f32 %v873_v39, %v869_v63  ;;  %v898_v20 = vmax.f32 %v890_v4, 0.0  ;;  %v2224_v63 = vpack.c.bf16 %v1072_v61, %v1071_v60  ;;  %v1073_v4 = vld [vmem:[#allocation5 + $0x10] sm:$0xff] }
 0x78e   :  { %v880_v15 = vmul.f32 %v873_v39, %v868_v2 }
 0x78f   :  { %v893_v22 = vadd.f32 %v885_v47, %v881_v49  ;;  %v904_v43 = vmax.f32 %v902_v26, %v898_v20  ;;  %2225 = vmatprep.subr.bf16.mxu0 %v2224_v63  ;;  %v1076_v49 = vld [vmem:[#allocation5 + $0x28] sm:$0xff]  ;;  %v1248_v26 = vld [vmem:[#allocation5 + $0x50] sm:$0xff] }
 0x790   :  { %v892_v25 = vadd.f32 %v885_v47, %v880_v15  ;;  %2227 = vmatpush3.bf16.msra.mxu0 %v2224_v63  ;;  %v1078_v15 = vld [vmem:[#allocation5 + $0x38] sm:$0xff] }
 0x791   :  { %v901_v27 = vmax.f32 %v893_v22, 0.0  ;;  %v2460_v22 = vmov 0.0  }
 0x792   :  { %v900_v32 = vmax.f32 %v892_v25, 0.0  ;;  %v1247_v25 = vld [vmem:[#allocation5 + $0x48] sm:$0xff] }
 0x793   :  { %v907_v29 = vmax.f32 %v905_v42, %v901_v27  ;;  %v1249_v42 = vld [vmem:[#allocation5 + $0x58] sm:$0xff] }
 0x794   :  { %v906_v30 = vmax.f32 %v904_v43, %v900_v32  ;;  %v1250_v43 = vld [vmem:[#allocation5 + $0x60] sm:$0xff] }
 0x796   :  { %v2317_v31 = vpack.i.bf16 %v907_v29, %v906_v30  ;;  %v1251_v29 = vld [vmem:[#allocation5 + $0x68] sm:$0xff] }
 0x797   :  { %v2250_v30 = vpack.c.bf16 %v1251_v29, %v1250_v43  ;;  %v1506_v43 = vld [vmem:[#allocation2 + $0x1a8] sm:$0xff]  ;;  %v1507_v29 = vld [vmem:[#allocation2 + $0x1b0] sm:$0xff] }
 0x798   :  { %2318 = vrot.lane.b32.xlu0 %v2317_v31, %s2457_s0 }
 0x80a   :  { %v2319_v28 = vpop.permute.xlu0 %2318 }
 0x80b   :  { %v2321_v33 = vunpack.i.h.bf16 %v2319_v28  ;;  %v2320_v34 = vunpack.i.l.bf16 %v2319_v28 }
 0x80d   :  { %v916_v51 = vsel %vm198_vm1, %v894_v13, %v2320_v34  ;;  %v917_v35 = vsel %vm198_vm1, %v895_v21, %v2321_v33  ;;  %v918_v57 = vsel %vm198_vm1, %v896_v6, %v2320_v34  ;;  %v919_v52 = vsel %vm198_vm1, %v897_v0, %v2321_v33  ;;  %v1074_v0 = vld [vmem:[#allocation5 + $0x18] sm:$0xff]  ;;  %v1075_v6 = vld [vmem:[#allocation5 + $0x20] sm:$0xff] }
 0x80e   :  { %2003 = vmatprep.mubr.f32.mxu1 %v916_v51  ;;  %v920_v41 = vsel %vm198_vm1, %v898_v20, %v2320_v34  ;;  %v921_v36 = vsel %vm198_vm1, %v899_v8, %v2321_v33  ;;  %v922_v37 = vsel %vm198_vm1, %v900_v32, %v2320_v34  ;;  %v923_v38 = vsel %vm198_vm1, %v901_v27, %v2321_v33  ;;  %v1077_v8 = vld [vmem:[#allocation5 + $0x30] sm:$0xff] }
 0x80f   :  { %2004 = vmatmul.mubr.f32.vlgmr.msra.gmra.mrb[8].mxu1 %v917_v35  ;;  %v2228_v2 = vpack.c.bf16 %v1074_v0, %v1073_v4  ;;  %v2232_v21 = vpack.c.bf16 %v1076_v49, %v1075_v6  ;;  %v2236_v13 = vpack.c.bf16 %v1078_v15, %v1077_v8  ;;  %v2458_v20 = vmov 0.0|0.0   ;;  %v1502_v8 = vld [vmem:[#allocation2 + $0x188] sm:$0xff]  ;;  %v1503_v15 = vld [vmem:[#allocation2 + $0x190] sm:$0xff] }
 0x810   :  { %2006 = vmatprep.mubr.f32.mxu1 %v918_v57  ;;  %2243 = vmatprep.subr.bf16.mxu1 %v2458_v20  ;;  %v2244_v27 = vpack.c.bf16 %v1247_v25, %v1246_v24  ;;  %v2247_v32 = vpack.c.bf16 %v1249_v42, %v1248_v26  ;;  %v1167_v57 = vand.u32 127, %v64_v9  ;;  %v1252_v9 = vld [vmem:[#allocation5 + $0x70] sm:$0xff]  ;;  %v2262_v25 = vpack.c.bf16 %v1503_v15, %v1502_v8 }
 0x811   :  { %2229 = vmatprep.subr.bf16.mxu0 %v2228_v2  ;;  %v1504_v26 = vld [vmem:[#allocation2 + $0x198] sm:$0xff]  ;;  %v1614_v8 = vrot.slane %v2778_v40, %v589_v23 }
 0x812   :  { %2231 = vmatpush3.bf16.msra.mxu0 %v2228_v2  ;;  %2245 = vmatpush3.bf16.msra.mxu1 %v2244_v27  ;;  %v1505_v27 = vld [vmem:[#allocation2 + $0x1a0] sm:$0xff] }
 0x813   :  { %2007 = vmatmul.mubr.f32.gmra.mrb[10].mxu1 %v919_v52  ;;  %2233 = vmatprep.subr.bf16.mxu0 %v2232_v21  ;;  %v1168_v52 = vmul.u32 8, %v2555_v10 }
 0x814   :  { %2009 = vmatprep.mubr.f32.mxu1 %v920_v41  ;;  %2246 = vmatprep.subr.bf16.mxu1 %v2458_v20 }
 0x815   :  { %vm1169_vm3 = vcmp.eq.s32.totalorder %v1167_v57, %v1168_v52  ;;  %vm1401_vm6 = vcmp.ge.s32.totalorder %v1167_v57, %v1168_v52 }
 0x816   :  { %2235 = vmatpush3.bf16.msra.mxu0 %v2232_v21  ;;  %2248 = vmatpush3.bf16.msra.mxu1 %v2247_v32  ;;  %v2265_v32 = vpack.c.bf16 %v1505_v27, %v1504_v26 }
 0x817   :  { %2010 = vmatmul.mubr.f32.gmra.mrb[12].mxu1 %v921_v36  ;;  %2237 = vmatprep.subr.bf16.mxu0 %v2236_v13 }
 0x818   :  { %2012 = vmatprep.mubr.f32.mxu1 %v922_v37  ;;  %2249 = vmatprep.subr.bf16.mxu1 %v2458_v20 }
 0x81a   :  { %2239 = vmatpush3.bf16.msra.mxu0 %v2236_v13  ;;  %2251 = vmatpush3.bf16.msra.mxu1 %v2250_v30  ;;  %v2268_v30 = vpack.c.bf16 %v1507_v29, %v1506_v43 }
 0x81b   :  { %2013 = vmatmul.mubr.f32.gmra.mrb[14].mxu1 %v923_v38  ;;  %2240 = vmatprep.subr.bf16.mxu0 %v2458_v20  ;;  %v1729_v38 = vsel %vm1169_vm3, 1.0, %v2460_v22 }
 0x81c   :  { %2057 = vmatprep.mubr.msk.f32.mxu1 %vm2459_vm2, %v2460_v22  ;;  %2252 = vmatprep.subr.bf16.mxu1 %v2458_v20 }
 0x8e2   :  { %v2005_v39 = vpop.f32.mrb[8].mxu1 }
 0x8e3   :  { %v1006_v62 = vpop.f32.mrb[9].mxu1 }
 0x8e6   :  { %v2008_v12 = vpop.f32.mrb[10].mxu1 }
 0x8e7   :  { %v1046_v3 = vmax.f32 %v2005_v39, %v2008_v12  ;;  %v1016_v19 = vpop.f32.mrb[11].mxu1  ;;  %v1253_v39 = vld [vmem:[#allocation5 + $0x78] sm:$0xff] }
 0x8e8   :  { %v1045_v44 = vmax.f32 %v1006_v62, %v1016_v19  ;;  %v2253_v62 = vpack.c.bf16 %v1253_v39, %v1252_v9  ;;  %v2821_v12 = vld [vmem:[%s2888_s5] sm:$0xff] }
 0x8e9   :  { %v1517_v9 = vld [vmem:[#allocation2 + $0x200] sm:$0xff] }
 0x8ea   :  { %v2011_v45 = vpop.f32.mrb[12].mxu1  ;;  %2254 = vmatpush3.bf16.msra.mxu1 %v2253_v62 }
 0x8eb   :  { %v1048_v54 = vmax.f32 %v1046_v3, %v2011_v45  ;;  %v1026_v47 = vpop.f32.mrb[13].mxu1  ;;  %2285 = vmatprep.subr.bf16.mxu1 %v2458_v20  ;;  %v1082_v3 = vrot.slane %v2821_v12, %v2558_v11 }
 0x8ec   :  { %v1047_v46 = vmax.f32 %v1045_v44, %v1026_v47 }
 0x8ee   :  { %v2014_v1 = vpop.f32.mrb[14].mxu1 }
 0x8ef   :  { %v1050_v58 = vmax.f32 %v1048_v54, %v2014_v1  ;;  %v1036_v59 = vpop.f32.mrb[15].mxu1 }
 0x8f0   :  { %v1049_v7 = vmax.f32 %v1047_v46, %v1036_v59 }
 0x8f1   :  { %v1056_v50 = vadd.f32 %v1054_v48, %v1050_v58 }
 0x8f2   :  { %v1055_v53 = vadd.f32 %v1054_v48, %v1049_v7  ;;  %v1257_v48 = vrot.slane %v2821_v12, %v2616_v5 }
 0x8f3   :  { %v1058_v56 = vmul.f32 %v1056_v50, %v1056_v50 }
 0x8f4   :  { %v1057_v14 = vmul.f32 %v1055_v53, %v1055_v53 }
 0x8f5   :  { %v1062_v17 = vsel %vm198_vm1, %v1058_v56, 0.0 }
 0x8f6   :  { %v1059_v55 = vsel %vm198_vm1, %v1057_v14, 0.0 }
 0x8f7   :  { %1060 = vadd.xlane.f32.xlu1 %v1059_v55  ;;  %v2461_v55 = vmov 0  }
 0x8fb   :  { %1063 = vadd.xlane.f32.xlu1 %v1062_v17  ;;  %v1622_v17 = vld [vmem:[#allocation5 + $0xa8] sm:$0xff] }
 0x984   :  { %v1061_v31 = vpop.xlane.xlu1 %1060 }
 0x985   :  { %v1065_v28 = vmax.f32 %v1061_v31, 1e-24  ;;  %v1508_v31 = vld [vmem:[#allocation2 + $0x1b8] sm:$0xff] }
 0x987   :  { %2370 = vrsqrt.f32 %v1065_v28  ;;  %v1509_v28 = vld [vmem:[#allocation2 + $0x1c0] sm:$0xff] }
 0x988   :  { %v1064_v33 = vpop.xlane.xlu1 %1063 }
 0x989   :  { %v1066_v34 = vmax.f32 %v1064_v33, 1e-24  ;;  %v2271_v33 = vpack.c.bf16 %v1509_v28, %v1508_v31 }
 0x98b   :  { %2372 = vrsqrt.f32 %v1066_v34  ;;  %v1510_v34 = vld [vmem:[#allocation2 + $0x1c8] sm:$0xff] }
 0x991   :  { %v2371_v51 = vpop.eup %2370 }
 0x992   :  { %v1069_v35 = vmul.f32 %v2371_v51, %v1055_v53  ;;  %v1402_v53 = vadd.s32 1, %v2555_v10  ;;  %v1511_v51 = vld [vmem:[#allocation2 + $0x1d0] sm:$0xff] }
 0x994   :  { %2031 = vmatprep.mubr.msk.f32.mxu0 %vm198_vm1, %v1069_v35  ;;  %v1403_v14 = vmul.u32 8, %v1402_v53 }
 0x995   :  { %v2373_v41 = vpop.eup %2372 }
 0x996   :  { %v1070_v36 = vmul.f32 %v2373_v41, %v1056_v50  ;;  %v1406_v50 = vld [vmem:[%s2884_s1] sm:$0x1]  ;;  %vm1404_vm7 = vcmp.lt.s32.totalorder %v1167_v57, %v1403_v14  ;;  %v1514_v41 = vld [vmem:[#allocation2 + $0x1e8] sm:$0xff]  ;;  %v1619_v14 = vld [vmem:[#allocation5 + $0x90] sm:$0xff]  ;;  %s2462_s1 = smov [#allocation7]  }
 0x997   :  { %vm1407_vm5 = vcmp.gt.f32.partialorder %v1406_v50, 0.0  ;;  %vm1405_vm8 = vmand %vm1401_vm6, %vm1404_vm7  ;;  %v1513_v57 = vld [vmem:[#allocation2 + $0x1e0] sm:$0xff]  ;;  %v1618_v50 = vld [vmem:[#allocation5 + $0x88] sm:$0xff]  ;;  %s1709_s2 = sshll.u32 %s2462_s1, 4  ;;  %s1710_s2 = int_to_ptr.vmem [resolvable:$true] %s1709_s2 }
 0x998   :  { %2032 = vmatmul.mubr.msk.f32.vlgmr.msra.gmra.mrb[16].mxu0 %vm198_vm1, %v1070_v36  ;;  %v2241_v37 = vpack.c.bf16 %v1070_v36, %v1069_v35  ;;  %v1408_v5 = vsel %vm1407_vm5, 1, %v2461_v55  ;;  %v2274_v35 = vpack.c.bf16 %v1511_v51, %v1510_v34  ;;  %v1515_v36 = vld [vmem:[#allocation2 + $0x1f0] sm:$0xff]  ;;  %v1620_v55 = vld [vmem:[#allocation5 + $0x98] sm:$0xff]  ;;  %s2425_s21 = scalar_lea.vmem %s1710_s2, 32  ;;  %p2430_p3 = scmp.lt.s32.totalorder %s1710_s2, %s1710_s2 }
 0x999   :  { %2038 = vmatprep.mubr.msk.f32.mxu0 %vm2459_vm2, %v2460_v22  ;;  %v1412_v56 = vrot.slane %v1408_v5, %v2558_v11  ;;  %v2289_v5 = vpack.c.bf16 %v1620_v55, %v1619_v14  ;;  %p2426_p2 = scmp.ne.s32.totalorder %s1710_s2, %s2425_s21  ;;  %p2431_p4 = scmp.lt.s32.totalorder %s2425_s21, %s2425_s21 }
 0x99a   :  { %2242 = vmatpush3.bf16.msra.mxu0 %v2241_v37  ;;  %v2280_v37 = vpack.c.bf16 %v1515_v36, %v1514_v41 }
 0x99b   :  { %2255 = vmatprep.subr.bf16.mxu0 %v2458_v20  ;;  %vm1413_vm9 = vcmp.eq.s32.totalorder %v1412_v56, 1  ;;  %v1621_v56 = vld [vmem:[#allocation5 + $0xa0] sm:$0xff]  ;;  %p2432_p5 = por %p2431_p4, %p2430_p3 }
 0x99c   :  { %vm2839_vm10 = vmand %vm1405_vm8, %vm1413_vm9 }
 0x99d   :  { %2039 = vmatmul.mubr.msk.f32.vlgmr.msra.gmra.mrb[18].mxu0 %vm1172_vm4, %v1729_v38  ;;  %v1516_v38 = vld [vmem:[#allocation2 + $0x1f8] sm:$0xff]  ;;  %p2433_p6 = pnand %p2432_p5, %p2426_p2 }
 0x99e   :  { %2064 = vmatprep.mubr.msk.f32.mxu0 %vm2459_vm2, %v2460_v22  ;;  %v2283_v39 = vpack.c.bf16 %v1517_v9, %v1516_v38 }
 0xa6b   :  { %v2033_v19 = vpop.f32.mrb[16].mxu0 }
 0xa6c   :  { %v1161_v44 = vadd.f32 %v2033_v19, %v1082_v3  ;;  %v1155_v45 = vpop.f32.mrb[17].mxu0  ;;  %v1521_v19 = vrot.slane %v2778_v40, %v2620_v16 }
 0xa6d   :  { %v1156_v54 = vadd.f32 %v1155_v45, %v1082_v3 }
 0xa6f   :  { %v2256_v47 = vpack.c.bf16 %v1161_v44, %v1156_v54 }
 0xa70   :  { %v1242_v46 = vpop.f32.mrb[18].mxu0 }
 0xa71   :  { %v2040_v1 = vpop.f32.mrb[19].mxu0  ;;  %2058 = vmatmul.mubr.msk.f32.vlgmr.msra.gmra.mrb[16].mxu1 %vm198_vm1, %v1242_v46  ;;  %2257 = vmatpush3.bf16.xpose.msra.mxu0 %v2256_v47 }
 0xa72   :  { %2258 = vmatprep.subr.bf16.mxu0 %v2458_v20  ;;  %2125 = vmatprep.mubr.msk.f32.mxu1 %vm2459_vm2, %v2460_v22 }
 0xb44   :  { %v1327_v58 = vpop.f32.mrb[16].mxu1 }
 0xb45   :  { %v1328_v59 = vadd.f32 %v1327_v58, %v1257_v48  ;;  %v2059_v7 = vpop.f32.mrb[17].mxu1 }
 0xb46   :  { %v1617_v7 = vld [vmem:[#allocation5 + $0x80] sm:$0xff] }
 0xb47   :  { %2065 = vmatmul.mubr.f32.vlgmr.msra.gmra.mrb[20].mxu0 %v1328_v59  ;;  %v2286_v53 = vpack.c.bf16 %v1618_v50, %v1617_v7 }
 0xb48   :  { %2260 = vmatpush3.bf16.msra.mxu0 %v2256_v47  ;;  %2071 = vmatprep.mubr.msk.f32.mxu0 %vm2459_vm2, %v2460_v22 }
 0xb49   :  { %2261 = vmatprep.subr.bf16.mxu0 %v2458_v20  ;;  %2287 = vmatpush3.bf16.msra.mxu1 %v2286_v53 }
 0xb4a   :  { %2288 = vmatprep.subr.bf16.mxu1 %v2458_v20 }
 0xb4d   :  { %2290 = vmatpush3.bf16.msra.mxu1 %v2289_v5 }
 0xb4e   :  { %2291 = vmatprep.subr.bf16.mxu1 %v2458_v20 }
 0xc1a   :  { %v1397_v60 = vpop.f32.mrb[20].mxu0 }
 0xc1b   :  { %v1415_v61 = vsel %vm2839_vm10, %v1397_v60, -1e+30  ;;  %v2066_v63 = vpop.f32.mrb[21].mxu0  ;;  %v2292_v60 = vpack.c.bf16 %v1622_v17, %v1621_v56 }
 0xc1c   :  { %v1417_v4 = vsel %vm1416_vm11, %v1415_v61, -inf  ;;  %v1624_v63 = vld [vmem:[#allocation5 + $0xb8] sm:$0xff] }
 0xc1d   :  { %1418 = vmax.xlane.f32.xlu1 %v1417_v4  ;;  %2293 = vmatpush3.bf16.msra.mxu1 %v2292_v60 }
 0xc1e   :  { %2294 = vmatprep.subr.bf16.mxu1 %v2458_v20 }
 0xcaa   :  { %v1419_v0 = vpop.xlane.xlu1 %1418 }
 0xcab   :  { %v1420_v2 = vsub.f32 %v1415_v61, %v1419_v0  ;;  %v1623_v61 = vld [vmem:[#allocation5 + $0xb0] sm:$0xff] }
 0xcac   :  { %v2295_v4 = vpack.c.bf16 %v1624_v63, %v1623_v61 }
 0xcad   :  { %v1421_v6 = vmul.f32 1.442695, %v1420_v2 }
 0xcae   :  { %2296 = vmatpush3.bf16.msra.mxu1 %v2295_v4 }
 0xcaf   :  { %2374 = vpow2.f32 %v1421_v6 }
 0xcb9   :  { %v2375_v11 = vpop.eup %2374 }
 0xcba   :  { %v1423_v49 = vsel %vm1416_vm11, %v2375_v11, 0.0 }
 0xcbb   :  { %1424 = vadd.xlane.f32.xlu1 %v1423_v49 }
 0xd48   :  { %v1425_v21 = vpop.xlane.xlu1 %1424 }
 0xd49   :  { %2376 = vrcp.f32 %v1425_v21 }
 0xd53   :  { %v2377_v13 = vpop.eup %2376 }
 0xd54   :  { %v1427_v24 = vmul.f32 %v2377_v13, %v2375_v11  ;;  %v1609_v11 = vrot.slane %v2778_v40, %v376_v18 }
 0xd56   :  { %v1428_v42 = vsel %vm2839_vm10, %v1427_v24, 0.0 }
 0xd57   :  { %2072 = vmatmul.mubr.msk.f32.vlgmr.msra.gmra.mrb[22].mxu0 %vm1172_vm4, %v1428_v42 }
 0xd58   :  { %2263 = vmatpush3.bf16.msra.mxu0 %v2262_v25  ;;  %2106 = vmatprep.mubr.msk.f32.mxu0 %vm2459_vm2, %v2460_v22  ;;  %v1512_v22 = vld [vmem:[#allocation2 + $0x1d8] sm:$0xff] }
 0xd59   :  { %2264 = vmatprep.subr.bf16.mxu0 %v2458_v20  ;;  %v2277_v52 = vpack.c.bf16 %v1513_v57, %v1512_v22 }
 0xd5c   :  { %2266 = vmatpush3.bf16.msra.mxu0 %v2265_v32 }
 0xd5d   :  { %2267 = vmatprep.subr.bf16.mxu0 %v2458_v20 }
 0xd60   :  { %2269 = vmatpush3.bf16.msra.mxu0 %v2268_v30 }
 0xd61   :  { %2270 = vmatprep.subr.bf16.mxu0 %v2458_v20 }
 0xd64   :  { %2272 = vmatpush3.bf16.msra.mxu0 %v2271_v33 }
 0xd65   :  { %2273 = vmatprep.subr.bf16.mxu0 %v2458_v20 }
 0xd68   :  { %2275 = vmatpush3.bf16.msra.mxu0 %v2274_v35 }
 0xd69   :  { %2276 = vmatprep.subr.bf16.mxu0 %v2458_v20 }
 0xd6c   :  { %2278 = vmatpush3.bf16.msra.mxu0 %v2277_v52 }
 0xd6d   :  { %2279 = vmatprep.subr.bf16.mxu0 %v2458_v20 }
 0xd70   :  { %2281 = vmatpush3.bf16.msra.mxu0 %v2280_v37 }
 0xd71   :  { %2282 = vmatprep.subr.bf16.mxu0 %v2458_v20  ;;  %v1628_v20 = vrot.slane %v2821_v12, %v2620_v16 }
 0xd74   :  { %2284 = vmatpush3.bf16.msra.mxu0 %v2283_v39 }
 0xe2a   :  { %v1498_v62 = vpop.f32.mrb[22].mxu0 }
 0xe2b   :  { %v2073_v3 = vpop.f32.mrb[23].mxu0  ;;  %2107 = vmatmul.mubr.f32.vlgmr.msra.gmra.mrb[24].mxu0 %v1498_v62 }
 0xefe   :  { %v1588_v44 = vpop.f32.mrb[24].mxu0 }
 0xeff   :  { %v1589_v45 = vadd.f32 %v1588_v44, %v1521_v19  ;;  %v2108_v54 = vpop.f32.mrb[25].mxu0 }
 0xf01   :  { %v1593_v47 = vsel %vm1592_vm12, %v1589_v45, 0.0 }
 0xf02   :  { %1594 = vadd.xlane.f32.xlu1 %v1593_v47 }
 0xf8f   :  { %v1595_v46 = vpop.xlane.xlu1 %1594 }
 0xf90   :  { %v1596_v1 = vmul.f32 0.015625, %v1595_v46 }
 0xf92   :  { %v1597_v48 = vsub.f32 %v1589_v45, %v1596_v1 }
 0xf94   :  { %v1598_v58 = vmul.f32 %v1597_v48, %v1597_v48 }
 0xf96   :  { %v1599_v59 = vsel %vm1592_vm12, %v1598_v58, 0.0 }
 0xf97   :  { %1600 = vadd.xlane.f32.xlu1 %v1599_v59 }
0x1024   :  { %v1601_v0 = vpop.xlane.xlu1 %1600 }
0x1025   :  { %v1602_v2 = vmul.f32 0.015625, %v1601_v0 }
0x1027   :  { %v1603_v6 = vadd.f32 1e-05, %v1602_v2 }
0x1029   :  { %2378 = vrsqrt.f32 %v1603_v6 }
0x1033   :  { %v2379_v49 = vpop.eup %2378 }
0x1034   :  { %v1605_v21 = vmul.f32 %v2379_v49, %v1597_v48 }
0x1036   :  { %v1610_v15 = vmul.f32 %v1609_v11, %v1605_v21 }
0x1038   :  { %v1615_v13 = vadd.f32 %v1614_v8, %v1610_v15 }
0x103a   :  { %v1616_v24 = vmax.f32 %v1615_v13, 0.0 }
0x103c   :  { %2126 = vmatmul.mubr.msk.f32.vlgmr.msra.gmra.mrb[18].mxu1 %vm198_vm1, %v1616_v24 }
0x110f   :  { %v1698_v25 = vpop.f32.mrb[18].mxu1 }
0x1110   :  { %v1699_v26 = vadd.f32 %v1698_v25, %v1628_v20  ;;  %v2127_v27 = vpop.f32.mrb[19].mxu1 }
0x1112   :  { %1702 = vst [vmem:[#allocation7] sm:$0x3] %v1699_v26 }
0x1113   :  { %2436 = shalt.err (!%p2433_p6)
}
0x1114   :  { %s2437_s24 = scalar_lea.hbm %s2889_s6, 32 }
0x1115   :  { %p2438_p7 = scmp.ne.s32.totalorder %s2889_s6, %s2437_s24  ;;  %p2441_p8 = scmp.lt.u32.totalorder %s2437_s24, %s2889_s6 }
0x1117   :  { %p2443_p9 = pnand %p2441_p8, %p2438_p7 }
0x1119   :  { %2446 = shalt.err (!%p2443_p9)
}
0x111a   :  { %1712 = dma.vmem_to_hbm [thread:$0]  %s1710_s2, 32, %s2889_s6, [#allocation4]  }
0x111b   :  { %2451 = dma.done.wait [#allocation4], 32  }
0x111c   :  { %2452 = vsyncadd [#allocation4], 4294967264 }
0x111d   :  { %1716 = vsyncpa [#allocation3], 1 }
0x111e   :  { %1717 = vsyncpa [#allocation6], 1 }
0x111f   :  { %1718 = vsyncpa [#allocation4], 1 }

</bundles_post_ra>
